<compile_context>
chip_gen: v5e
topology: v5e:2x2
jax: 0.10.0
libtpu: 0.0.40
codegen_flags: <defaults>
</compile_context>

<pallas_src>
import functools

import numpy as np
import jax
import jax.numpy as jnp
from jax import lax
from jax.experimental import pallas as pl
from jax.experimental.pallas import tpu as pltpu


def _conv_basis_kernel(x_ref, w_ref, o_ref, rhs_ref, *,
                       K, bsz, bsz_p, Wp, Wo, Ho, B_blk, ones_row):
    """One grid step = B_blk images.

    x_ref:   (B_blk, bsz, Lin)    zero-padded images, flattened row-major
                                  (padded row width = Wp)
    w_ref:   (n_basis, R)         stacked per-tap weights + bias column
    o_ref:   (B_blk, n_basis, Ho*Wo)  final flat channel-major output layout
    rhs_ref: (R, Ho*Wp)           VMEM scratch: im2col-stacked RHS (+ ones row)
    """
    Lw = Ho * Wp
    cdtype = rhs_ref.dtype

    # Rebuild the constant part of the stacked RHS every step (zero pad rows,
    # ones row for the folded bias).  One aligned full-scratch store; never
    # relies on scratch persistence across grid points (megacore-safe).
    row_id = lax.broadcasted_iota(jnp.int32, rhs_ref.shape, 0)
    rhs_ref[...] = (row_id == ones_row).astype(cdtype)

    for b in range(B_blk):                       # static unroll (small B_blk)
        # Fused im2col in VMEM: stack the K*K tap windows on the sublane axis.
        # Tap (kh, kw) is just a lane window at flat offset kh*Wp + kw.
        for kk in range(K * K):
            kh, kw = divmod(kk, K)
            rhs_ref[pl.ds(kk * bsz_p, bsz), :] = (
                x_ref[b, :, pl.ds(kh * Wp + kw, Lw)])

        # One MXU contraction does all taps + bias (f32 accumulation).
        acc = jnp.dot(w_ref[...], rhs_ref[...],
                      preferred_element_type=jnp.float32,
                      precision=lax.Precision.HIGHEST)      # (n_basis, Lw)

        # Drop the 2*pad garbage columns of every wide row -> the output block
        # already holds the exact final (n_basis, Ho*Wo) layout (dense DMA
        # writeback; only free reshapes remain in the wrapper).
        for h in range(Ho):
            o_ref[b, :, pl.ds(h * Wo, Wo)] = (
                acc[:, h * Wp:h * Wp + Wo].astype(o_ref.dtype))


def _pick_block_batch(ng, per_image_bytes, vmem_block_budget=8 << 20,
                      max_images=8):
    """Images per grid step: divisor of ng, fits VMEM (double-buffered),
    prefers an even grid length >= 2 so both v7x TensorCores get work."""
    cap = max(1, min(max_images,
                     int(vmem_block_budget // max(1, 2 * per_image_bytes))))
    divisors = [d for d in range(1, ng + 1) if ng % d == 0]
    preds = (
        lambda d: d <= cap and (ng // d) >= 2 and (ng // d) % 2 == 0,
        lambda d: d <= cap and (ng // d) >= 2,
        lambda d: d <= cap,
    )
    for pred in preds:
        cands = [d for d in divisors if pred(d)]
        if cands:
            return max(cands)
    return 1


def conv_basis_forward(x, filter_bank, bias=None, *, basis_size, stride=1,
                       compute_dtype=None, block_images=None):
    """Replicates conv_basis.forward: split channels into groups of
    `basis_size`, convolve each group with the shared filter_bank
    (padding = kernel_size // 2), concatenate results along channels."""
    n_basis, bsz, K, K2 = filter_bank.shape
    assert bsz == basis_size and K == K2
    N, C, H, W = x.shape
    assert C % basis_size == 0
    group = C // basis_size
    pad = K // 2
    NG = N * group

    cdtype = np.dtype(x.dtype) if compute_dtype is None else np.dtype(compute_dtype)

    # Stride-1 'same' geometry (stride>1 handled by exact subsampling below).
    Ho, Wo = H + 2 * pad - K + 1, W + 2 * pad - K + 1
    Hp, Wp = H + 2 * pad, W + 2 * pad
    Lw = Ho * Wp                      # "wide" per-image dot width
    Lout = Ho * Wo                    # final flat output width per image

    # Flat length so every tap window stays in bounds (extras feed only the
    # discarded wide columns of the last output row).
    need = Hp * Wp + K - 1
    extra_rows = -(-(need - Hp * Wp) // Wp)
    Lin = (Hp + extra_rows) * Wp

    # Fold group into batch (same filter bank per group), pad once, flatten.
    # allow_input_fusion below lets XLA fuse this pad into the kernel input.
    xg = x.reshape(NG, bsz, H, W)
    xp = jnp.pad(xg, ((0, 0), (0, 0), (pad, pad + extra_rows), (pad, pad)))
    xflat = xp.reshape(NG, bsz, Lin).astype(cdtype)

    # Stacked LHS: taps padded to 8-sublane blocks (aligned scratch stores),
    # plus one bias column aligned with the scratch's ones row.
    bsz_p = -(-bsz // 8) * 8
    ones_row = K * K * bsz_p
    R = ones_row + 8
    bias_arr = bias if bias is not None else jnp.zeros((n_basis,), x.dtype)
    w4 = jnp.transpose(filter_bank, (0, 2, 3, 1))           # (n_basis, K, K, bsz)
    w4 = jnp.pad(w4, ((0, 0), (0, 0), (0, 0), (0, bsz_p - bsz)))
    w_stack = w4.reshape(n_basis, K * K * bsz_p)
    w_full = jnp.concatenate(
        [w_stack, bias_arr.reshape(n_basis, 1),
         jnp.zeros((n_basis, R - ones_row - 1), w_stack.dtype)],
        axis=1).astype(cdtype)                               # (n_basis, R)

    itemsize = cdtype.itemsize
    per_image_bytes = (bsz * Lin + n_basis * Lout) * itemsize
    B_blk = block_images if block_images is not None else _pick_block_batch(
        NG, per_image_bytes)
    assert NG % B_blk == 0
    grid_len = NG // B_blk

    kernel = functools.partial(
        _conv_basis_kernel, K=K, bsz=bsz, bsz_p=bsz_p, Wp=Wp, Wo=Wo, Ho=Ho,
        B_blk=B_blk, ones_row=ones_row)

    cost = pl.CostEstimate(
        flops=int(2 * NG * n_basis * R * Lw),
        transcendentals=0,
        bytes_accessed=int(itemsize * (NG * bsz * Lin + NG * n_basis * Lout)
                           + int(w_full.size) * itemsize),
    )

    out = pl.pallas_call(
        kernel,
        out_shape=jax.ShapeDtypeStruct((NG, n_basis, Lout), cdtype),
        grid_spec=pltpu.PrefetchScalarGridSpec(
            num_scalar_prefetch=0,
            grid=(grid_len,),
            in_specs=[
                pl.BlockSpec((B_blk, bsz, Lin), lambda i: (i, 0, 0)),
                pl.BlockSpec((n_basis, R), lambda i: (0, 0)),
            ],
            out_specs=pl.BlockSpec((B_blk, n_basis, Lout), lambda i: (i, 0, 0)),
            scratch_shapes=[pltpu.VMEM((R, Lw), cdtype)],
        ),
        compiler_params=pltpu.CompilerParams(
            dimension_semantics=("parallel",),
            vmem_limit_bytes=32 * 1024 * 1024,   # headroom; safe on v5e/v6e/v7x
            allow_input_fusion=[True, False],    # fuse the pad into the input
        ),
        cost_estimate=cost,
    )(xflat, w_full)

    # Pure (free) reshapes: channel-major output needs no transpose or slice.
    out = out.reshape(N, group * n_basis, Ho, Wo)
    if stride != 1:
        # TODO(synk): stride>1 is exact (stride-1 'same' conv subsampled) but a
        # dedicated strided kernel would avoid computing the skipped positions.
        out = out[:, :, ::stride, ::stride]
    return out


def _reference_conv_basis(x, filter_bank, bias, basis_size, stride=1):
    """Pure-JAX reference using lax conv with feature groups."""
    n_basis, bsz, K, _ = filter_bank.shape
    N, C, H, W = x.shape
    group = C // basis_size
    pad = K // 2
    w = jnp.tile(filter_bank, (group, 1, 1, 1))   # [group*n_basis, bsz, K, K]
    out = lax.conv_general_dilated(
        x, w,
        window_strides=(stride, stride),
        padding=[(pad, pad), (pad, pad)],
        feature_group_count=group,
        dimension_numbers=("NCHW", "OIHW", "NCHW"),
        precision=lax.Precision.HIGHEST,
    )
    b = jnp.tile(bias, (group,)).reshape(1, group * n_basis, 1, 1)
    return out + b


if __name__ == "__main__":
    # Small shapes consistent with the module.
    N, in_channels, H, W = 2, 8, 16, 16
    basis_size, n_basis, kernel_size, stride = 4, 6, 3, 1
    group = in_channels // basis_size   # 2 -> exercises the grouped branch

    key = jax.random.PRNGKey(0)
    kx, kfb, kb, kx1 = jax.random.split(key, 4)
    x = jax.random.normal(kx, (N, in_channels, H, W), dtype=jnp.float32)
    filter_bank = jax.random.normal(
        kfb, (n_basis, basis_size, kernel_size, kernel_size), dtype=jnp.float32)
    bias = jax.random.normal(kb, (n_basis,), dtype=jnp.float32)

    fwd = jax.jit(functools.partial(
        conv_basis_forward, basis_size=basis_size, stride=stride))
    out = jax.block_until_ready(fwd(x, filter_bank, bias))
    ref = _reference_conv_basis(x, filter_bank, bias, basis_size, stride)
    assert out.shape == (N, group * n_basis, H, W), out.shape
    assert jnp.allclose(out, ref, atol=5e-2, rtol=2e-2), (
        float(jnp.max(jnp.abs(out - ref))))

    # group == 1 branch of the original module.
    x1 = jax.random.normal(kx1, (N, basis_size, H, W), dtype=jnp.float32)
    out1 = jax.block_until_ready(fwd(x1, filter_bank, bias))
    ref1 = _reference_conv_basis(x1, filter_bank, bias, basis_size, stride)
    assert out1.shape == (N, n_basis, H, W), out1.shape
    assert jnp.allclose(out1, ref1, atol=5e-2, rtol=2e-2), (
        float(jnp.max(jnp.abs(out1 - ref1))))

    # bf16-streamed perf path (f32 MXU accumulation); compare against the
    # reference evaluated on bf16-quantized operands.
    fwd_bf16 = jax.jit(functools.partial(
        conv_basis_forward, basis_size=basis_size, stride=stride,
        compute_dtype=jnp.bfloat16))
    out_b = jax.block_until_ready(fwd_bf16(x, filter_bank, bias))
    q = lambda a: a.astype(jnp.bfloat16).astype(jnp.float32)
    ref_b = _reference_conv_basis(q(x), q(filter_bank), q(bias), basis_size, stride)
    assert out_b.dtype == jnp.bfloat16
    assert jnp.allclose(out_b.astype(jnp.float32), ref_b, atol=1e-1, rtol=5e-2), (
        float(jnp.max(jnp.abs(out_b.astype(jnp.float32) - ref_b))))

    print("KERNEL_OK")
</pallas_src>

<mosaic_0001>
module attributes {stable_mosaic.version = 11 : i64} {
  func.func @_conv_basis_kernel(%arg0: i32, %arg1: memref<2x4x342xf32, #tpu.memory_space<vmem>>, %arg2: memref<6x80xf32, #tpu.memory_space<vmem>>, %arg3: memref<2x6x256xf32, #tpu.memory_space<vmem>>, %arg4: memref<80x288xf32, #tpu.memory_space<vmem>>) attributes {dimension_semantics = [#tpu.dimension_semantics<parallel>], iteration_bounds = array<i64: 2>, scalar_prefetch = 0 : i64, scratch_operands = 1 : i64, tpu.core_type = #tpu.core_type<tc>, window_params = [{transform_indices = @transform_0, window_bounds = array<i64: 2, 4, 342>}, {pipeline_mode = #tpu.pipeline_mode<synchronous>, transform_indices = @transform_1, window_bounds = array<i64: 6, 80>}, {transform_indices = @transform_2, window_bounds = array<i64: 2, 6, 256>}]} {
    %0 = tpu.iota {dimensions = array<i32: 0>} : vector<80x288xi32>
    %c72_i32 = arith.constant 72 : i32
    %1 = vector.broadcast %c72_i32 : i32 to vector<80x288xi32>
    %2 = arith.cmpi eq, %0, %1 : vector<80x288xi32>
    %3 = arith.extui %2 : vector<80x288xi1> to vector<80x288xi32>
    %4 = arith.sitofp %3 : vector<80x288xi32> to vector<80x288xf32>
    %c0 = arith.constant 0 : index
    %c0_0 = arith.constant 0 : index
    %5 = vector.load %arg4[%c0, %c0_0] : memref<80x288xf32, #tpu.memory_space<vmem>>, vector<80x288xf32>
    tpu.vector_store %arg4[%c0, %c0_0], %4 {strides = array<i32>} : memref<80x288xf32, #tpu.memory_space<vmem>>, vector<80x288xf32>,
    %c0_1 = arith.constant 0 : index
    %c0_2 = arith.constant 0 : index
    %c0_3 = arith.constant 0 : index
    %6 = vector.load %arg1[%c0_1, %c0_2, %c0_3] : memref<2x4x342xf32, #tpu.memory_space<vmem>>, vector<1x4x288xf32>
    %7 = vector.shape_cast %6 : vector<1x4x288xf32> to vector<4x288xf32>
    %c0_4 = arith.constant 0 : index
    %c0_5 = arith.constant 0 : index
    %8 = vector.load %arg4[%c0_4, %c0_5] : memref<80x288xf32, #tpu.memory_space<vmem>>, vector<4x288xf32>
    tpu.vector_store %arg4[%c0_4, %c0_5], %7 {strides = array<i32>} : memref<80x288xf32, #tpu.memory_space<vmem>>, vector<4x288xf32>,
    %c0_6 = arith.constant 0 : index
    %c0_7 = arith.constant 0 : index
    %c1 = arith.constant 1 : index
    %9 = vector.load %arg1[%c0_6, %c0_7, %c1] : memref<2x4x342xf32, #tpu.memory_space<vmem>>, vector<1x4x288xf32>
    %10 = vector.shape_cast %9 : vector<1x4x288xf32> to vector<4x288xf32>
    %c8 = arith.constant 8 : index
    %c0_8 = arith.constant 0 : index
    %11 = vector.load %arg4[%c8, %c0_8] : memref<80x288xf32, #tpu.memory_space<vmem>>, vector<4x288xf32>
    tpu.vector_store %arg4[%c8, %c0_8], %10 {strides = array<i32>} : memref<80x288xf32, #tpu.memory_space<vmem>>, vector<4x288xf32>,
    %c0_9 = arith.constant 0 : index
    %c0_10 = arith.constant 0 : index
    %c2 = arith.constant 2 : index
    %12 = vector.load %arg1[%c0_9, %c0_10, %c2] : memref<2x4x342xf32, #tpu.memory_space<vmem>>, vector<1x4x288xf32>
    %13 = vector.shape_cast %12 : vector<1x4x288xf32> to vector<4x288xf32>
    %c16 = arith.constant 16 : index
    %c0_11 = arith.constant 0 : index
    %14 = vector.load %arg4[%c16, %c0_11] : memref<80x288xf32, #tpu.memory_space<vmem>>, vector<4x288xf32>
    tpu.vector_store %arg4[%c16, %c0_11], %13 {strides = array<i32>} : memref<80x288xf32, #tpu.memory_space<vmem>>, vector<4x288xf32>,
    %c0_12 = arith.constant 0 : index
    %c0_13 = arith.constant 0 : index
    %c18 = arith.constant 18 : index
    %15 = vector.load %arg1[%c0_12, %c0_13, %c18] : memref<2x4x342xf32, #tpu.memory_space<vmem>>, vector<1x4x288xf32>
    %16 = vector.shape_cast %15 : vector<1x4x288xf32> to vector<4x288xf32>
    %c24 = arith.constant 24 : index
    %c0_14 = arith.constant 0 : index
    %17 = vector.load %arg4[%c24, %c0_14] : memref<80x288xf32, #tpu.memory_space<vmem>>, vector<4x288xf32>
    tpu.vector_store %arg4[%c24, %c0_14], %16 {strides = array<i32>} : memref<80x288xf32, #tpu.memory_space<vmem>>, vector<4x288xf32>,
    %c0_15 = arith.constant 0 : index
    %c0_16 = arith.constant 0 : index
    %c19 = arith.constant 19 : index
    %18 = vector.load %arg1[%c0_15, %c0_16, %c19] : memref<2x4x342xf32, #tpu.memory_space<vmem>>, vector<1x4x288xf32>
    %19 = vector.shape_cast %18 : vector<1x4x288xf32> to vector<4x288xf32>
    %c32 = arith.constant 32 : index
    %c0_17 = arith.constant 0 : index
    %20 = vector.load %arg4[%c32, %c0_17] : memref<80x288xf32, #tpu.memory_space<vmem>>, vector<4x288xf32>
    tpu.vector_store %arg4[%c32, %c0_17], %19 {strides = array<i32>} : memref<80x288xf32, #tpu.memory_space<vmem>>, vector<4x288xf32>,
    %c0_18 = arith.constant 0 : index
    %c0_19 = arith.constant 0 : index
    %c20 = arith.constant 20 : index
    %21 = vector.load %arg1[%c0_18, %c0_19, %c20] : memref<2x4x342xf32, #tpu.memory_space<vmem>>, vector<1x4x288xf32>
    %22 = vector.shape_cast %21 : vector<1x4x288xf32> to vector<4x288xf32>
    %c40 = arith.constant 40 : index
    %c0_20 = arith.constant 0 : index
    %23 = vector.load %arg4[%c40, %c0_20] : memref<80x288xf32, #tpu.memory_space<vmem>>, vector<4x288xf32>
    tpu.vector_store %arg4[%c40, %c0_20], %22 {strides = array<i32>} : memref<80x288xf32, #tpu.memory_space<vmem>>, vector<4x288xf32>,
    %c0_21 = arith.constant 0 : index
    %c0_22 = arith.constant 0 : index
    %c36 = arith.constant 36 : index
    %24 = vector.load %arg1[%c0_21, %c0_22, %c36] : memref<2x4x342xf32, #tpu.memory_space<vmem>>, vector<1x4x288xf32>
    %25 = vector.shape_cast %24 : vector<1x4x288xf32> to vector<4x288xf32>
    %c48 = arith.constant 48 : index
    %c0_23 = arith.constant 0 : index
    %26 = vector.load %arg4[%c48, %c0_23] : memref<80x288xf32, #tpu.memory_space<vmem>>, vector<4x288xf32>
    tpu.vector_store %arg4[%c48, %c0_23], %25 {strides = array<i32>} : memref<80x288xf32, #tpu.memory_space<vmem>>, vector<4x288xf32>,
    %c0_24 = arith.constant 0 : index
    %c0_25 = arith.constant 0 : index
    %c37 = arith.constant 37 : index
    %27 = vector.load %arg1[%c0_24, %c0_25, %c37] : memref<2x4x342xf32, #tpu.memory_space<vmem>>, vector<1x4x288xf32>
    %28 = vector.shape_cast %27 : vector<1x4x288xf32> to vector<4x288xf32>
    %c56 = arith.constant 56 : index
    %c0_26 = arith.constant 0 : index
    %29 = vector.load %arg4[%c56, %c0_26] : memref<80x288xf32, #tpu.memory_space<vmem>>, vector<4x288xf32>
    tpu.vector_store %arg4[%c56, %c0_26], %28 {strides = array<i32>} : memref<80x288xf32, #tpu.memory_space<vmem>>, vector<4x288xf32>,
    %c0_27 = arith.constant 0 : index
    %c0_28 = arith.constant 0 : index
    %c38 = arith.constant 38 : index
    %30 = vector.load %arg1[%c0_27, %c0_28, %c38] : memref<2x4x342xf32, #tpu.memory_space<vmem>>, vector<1x4x288xf32>
    %31 = vector.shape_cast %30 : vector<1x4x288xf32> to vector<4x288xf32>
    %c64 = arith.constant 64 : index
    %c0_29 = arith.constant 0 : index
    %32 = vector.load %arg4[%c64, %c0_29] : memref<80x288xf32, #tpu.memory_space<vmem>>, vector<4x288xf32>
    tpu.vector_store %arg4[%c64, %c0_29], %31 {strides = array<i32>} : memref<80x288xf32, #tpu.memory_space<vmem>>, vector<4x288xf32>,
    %c0_30 = arith.constant 0 : index
    %c0_31 = arith.constant 0 : index
    %33 = vector.load %arg2[%c0_30, %c0_31] : memref<6x80xf32, #tpu.memory_space<vmem>>, vector<6x80xf32>
    %c0_32 = arith.constant 0 : index
    %c0_33 = arith.constant 0 : index
    %34 = vector.load %arg4[%c0_32, %c0_33] : memref<80x288xf32, #tpu.memory_space<vmem>>, vector<80x288xf32>
    %cst = arith.constant dense<0.000000e+00> : vector<6x288xf32>
    %35 = tpu.matmul %33, %34, %cst {dimension_numbers = #tpu.dot_dimension_numbers<[1], [0], [0], [1], [0, 0, 1, 1], [], []>, precision = #tpu.contract_precision<fp32>} : vector<6x80xf32>, vector<80x288xf32>, vector<6x288xf32> -> vector<6x288xf32>
    %36 = vector.extract_strided_slice %35 {offsets = [0, 0], sizes = [6, 16], strides = [1, 1]} : vector<6x288xf32> to vector<6x16xf32>
    %c0_34 = arith.constant 0 : index
    %c0_35 = arith.constant 0 : index
    %c0_36 = arith.constant 0 : index
    %37 = vector.load %arg3[%c0_34, %c0_35, %c0_36] : memref<2x6x256xf32, #tpu.memory_space<vmem>>, vector<1x6x16xf32>
    %38 = vector.shape_cast %37 : vector<1x6x16xf32> to vector<6x16xf32>
    %39 = vector.shape_cast %36 : vector<6x16xf32> to vector<1x6x16xf32>
    tpu.vector_store %arg3[%c0_34, %c0_35, %c0_36], %39 {strides = array<i32>} : memref<2x6x256xf32, #tpu.memory_space<vmem>>, vector<1x6x16xf32>,
    %40 = vector.extract_strided_slice %35 {offsets = [0, 18], sizes = [6, 16], strides = [1, 1]} : vector<6x288xf32> to vector<6x16xf32>
    %c0_37 = arith.constant 0 : index
    %c0_38 = arith.constant 0 : index
    %c16_39 = arith.constant 16 : index
    %41 = vector.load %arg3[%c0_37, %c0_38, %c16_39] : memref<2x6x256xf32, #tpu.memory_space<vmem>>, vector<1x6x16xf32>
    %42 = vector.shape_cast %41 : vector<1x6x16xf32> to vector<6x16xf32>
    %43 = vector.shape_cast %40 : vector<6x16xf32> to vector<1x6x16xf32>
    tpu.vector_store %arg3[%c0_37, %c0_38, %c16_39], %43 {strides = array<i32>} : memref<2x6x256xf32, #tpu.memory_space<vmem>>, vector<1x6x16xf32>,
    %44 = vector.extract_strided_slice %35 {offsets = [0, 36], sizes = [6, 16], strides = [1, 1]} : vector<6x288xf32> to vector<6x16xf32>
    %c0_40 = arith.constant 0 : index
    %c0_41 = arith.constant 0 : index
    %c32_42 = arith.constant 32 : index
    %45 = vector.load %arg3[%c0_40, %c0_41, %c32_42] : memref<2x6x256xf32, #tpu.memory_space<vmem>>, vector<1x6x16xf32>
    %46 = vector.shape_cast %45 : vector<1x6x16xf32> to vector<6x16xf32>
    %47 = vector.shape_cast %44 : vector<6x16xf32> to vector<1x6x16xf32>
    tpu.vector_store %arg3[%c0_40, %c0_41, %c32_42], %47 {strides = array<i32>} : memref<2x6x256xf32, #tpu.memory_space<vmem>>, vector<1x6x16xf32>,
    %48 = vector.extract_strided_slice %35 {offsets = [0, 54], sizes = [6, 16], strides = [1, 1]} : vector<6x288xf32> to vector<6x16xf32>
    %c0_43 = arith.constant 0 : index
    %c0_44 = arith.constant 0 : index
    %c48_45 = arith.constant 48 : index
    %49 = vector.load %arg3[%c0_43, %c0_44, %c48_45] : memref<2x6x256xf32, #tpu.memory_space<vmem>>, vector<1x6x16xf32>
    %50 = vector.shape_cast %49 : vector<1x6x16xf32> to vector<6x16xf32>
    %51 = vector.shape_cast %48 : vector<6x16xf32> to vector<1x6x16xf32>
    tpu.vector_store %arg3[%c0_43, %c0_44, %c48_45], %51 {strides = array<i32>} : memref<2x6x256xf32, #tpu.memory_space<vmem>>, vector<1x6x16xf32>,
    %52 = vector.extract_strided_slice %35 {offsets = [0, 72], sizes = [6, 16], strides = [1, 1]} : vector<6x288xf32> to vector<6x16xf32>
    %c0_46 = arith.constant 0 : index
    %c0_47 = arith.constant 0 : index
    %c64_48 = arith.constant 64 : index
    %53 = vector.load %arg3[%c0_46, %c0_47, %c64_48] : memref<2x6x256xf32, #tpu.memory_space<vmem>>, vector<1x6x16xf32>
    %54 = vector.shape_cast %53 : vector<1x6x16xf32> to vector<6x16xf32>
    %55 = vector.shape_cast %52 : vector<6x16xf32> to vector<1x6x16xf32>
    tpu.vector_store %arg3[%c0_46, %c0_47, %c64_48], %55 {strides = array<i32>} : memref<2x6x256xf32, #tpu.memory_space<vmem>>, vector<1x6x16xf32>,
    %56 = vector.extract_strided_slice %35 {offsets = [0, 90], sizes = [6, 16], strides = [1, 1]} : vector<6x288xf32> to vector<6x16xf32>
    %c0_49 = arith.constant 0 : index
    %c0_50 = arith.constant 0 : index
    %c80 = arith.constant 80 : index
    %57 = vector.load %arg3[%c0_49, %c0_50, %c80] : memref<2x6x256xf32, #tpu.memory_space<vmem>>, vector<1x6x16xf32>
    %58 = vector.shape_cast %57 : vector<1x6x16xf32> to vector<6x16xf32>
    %59 = vector.shape_cast %56 : vector<6x16xf32> to vector<1x6x16xf32>
    tpu.vector_store %arg3[%c0_49, %c0_50, %c80], %59 {strides = array<i32>} : memref<2x6x256xf32, #tpu.memory_space<vmem>>, vector<1x6x16xf32>,
    %60 = vector.extract_strided_slice %35 {offsets = [0, 108], sizes = [6, 16], strides = [1, 1]} : vector<6x288xf32> to vector<6x16xf32>
    %c0_51 = arith.constant 0 : index
    %c0_52 = arith.constant 0 : index
    %c96 = arith.constant 96 : index
    %61 = vector.load %arg3[%c0_51, %c0_52, %c96] : memref<2x6x256xf32, #tpu.memory_space<vmem>>, vector<1x6x16xf32>
    %62 = vector.shape_cast %61 : vector<1x6x16xf32> to vector<6x16xf32>
    %63 = vector.shape_cast %60 : vector<6x16xf32> to vector<1x6x16xf32>
    tpu.vector_store %arg3[%c0_51, %c0_52, %c96], %63 {strides = array<i32>} : memref<2x6x256xf32, #tpu.memory_space<vmem>>, vector<1x6x16xf32>,
    %64 = vector.extract_strided_slice %35 {offsets = [0, 126], sizes = [6, 16], strides = [1, 1]} : vector<6x288xf32> to vector<6x16xf32>
    %c0_53 = arith.constant 0 : index
    %c0_54 = arith.constant 0 : index
    %c112 = arith.constant 112 : index
    %65 = vector.load %arg3[%c0_53, %c0_54, %c112] : memref<2x6x256xf32, #tpu.memory_space<vmem>>, vector<1x6x16xf32>
    %66 = vector.shape_cast %65 : vector<1x6x16xf32> to vector<6x16xf32>
    %67 = vector.shape_cast %64 : vector<6x16xf32> to vector<1x6x16xf32>
    tpu.vector_store %arg3[%c0_53, %c0_54, %c112], %67 {strides = array<i32>} : memref<2x6x256xf32, #tpu.memory_space<vmem>>, vector<1x6x16xf32>,
    %68 = vector.extract_strided_slice %35 {offsets = [0, 144], sizes = [6, 16], strides = [1, 1]} : vector<6x288xf32> to vector<6x16xf32>
    %c0_55 = arith.constant 0 : index
    %c0_56 = arith.constant 0 : index
    %c128 = arith.constant 128 : index
    %69 = vector.load %arg3[%c0_55, %c0_56, %c128] : memref<2x6x256xf32, #tpu.memory_space<vmem>>, vector<1x6x16xf32>
    %70 = vector.shape_cast %69 : vector<1x6x16xf32> to vector<6x16xf32>
    %71 = vector.shape_cast %68 : vector<6x16xf32> to vector<1x6x16xf32>
    tpu.vector_store %arg3[%c0_55, %c0_56, %c128], %71 {strides = array<i32>} : memref<2x6x256xf32, #tpu.memory_space<vmem>>, vector<1x6x16xf32>,
    %72 = vector.extract_strided_slice %35 {offsets = [0, 162], sizes = [6, 16], strides = [1, 1]} : vector<6x288xf32> to vector<6x16xf32>
    %c0_57 = arith.constant 0 : index
    %c0_58 = arith.constant 0 : index
    %c144 = arith.constant 144 : index
    %73 = vector.load %arg3[%c0_57, %c0_58, %c144] : memref<2x6x256xf32, #tpu.memory_space<vmem>>, vector<1x6x16xf32>
    %74 = vector.shape_cast %73 : vector<1x6x16xf32> to vector<6x16xf32>
    %75 = vector.shape_cast %72 : vector<6x16xf32> to vector<1x6x16xf32>
    tpu.vector_store %arg3[%c0_57, %c0_58, %c144], %75 {strides = array<i32>} : memref<2x6x256xf32, #tpu.memory_space<vmem>>, vector<1x6x16xf32>,
    %76 = vector.extract_strided_slice %35 {offsets = [0, 180], sizes = [6, 16], strides = [1, 1]} : vector<6x288xf32> to vector<6x16xf32>
    %c0_59 = arith.constant 0 : index
    %c0_60 = arith.constant 0 : index
    %c160 = arith.constant 160 : index
    %77 = vector.load %arg3[%c0_59, %c0_60, %c160] : memref<2x6x256xf32, #tpu.memory_space<vmem>>, vector<1x6x16xf32>
    %78 = vector.shape_cast %77 : vector<1x6x16xf32> to vector<6x16xf32>
    %79 = vector.shape_cast %76 : vector<6x16xf32> to vector<1x6x16xf32>
    tpu.vector_store %arg3[%c0_59, %c0_60, %c160], %79 {strides = array<i32>} : memref<2x6x256xf32, #tpu.memory_space<vmem>>, vector<1x6x16xf32>,
    %80 = vector.extract_strided_slice %35 {offsets = [0, 198], sizes = [6, 16], strides = [1, 1]} : vector<6x288xf32> to vector<6x16xf32>
    %c0_61 = arith.constant 0 : index
    %c0_62 = arith.constant 0 : index
    %c176 = arith.constant 176 : index
    %81 = vector.load %arg3[%c0_61, %c0_62, %c176] : memref<2x6x256xf32, #tpu.memory_space<vmem>>, vector<1x6x16xf32>
    %82 = vector.shape_cast %81 : vector<1x6x16xf32> to vector<6x16xf32>
    %83 = vector.shape_cast %80 : vector<6x16xf32> to vector<1x6x16xf32>
    tpu.vector_store %arg3[%c0_61, %c0_62, %c176], %83 {strides = array<i32>} : memref<2x6x256xf32, #tpu.memory_space<vmem>>, vector<1x6x16xf32>,
    %84 = vector.extract_strided_slice %35 {offsets = [0, 216], sizes = [6, 16], strides = [1, 1]} : vector<6x288xf32> to vector<6x16xf32>
    %c0_63 = arith.constant 0 : index
    %c0_64 = arith.constant 0 : index
    %c192 = arith.constant 192 : index
    %85 = vector.load %arg3[%c0_63, %c0_64, %c192] : memref<2x6x256xf32, #tpu.memory_space<vmem>>, vector<1x6x16xf32>
    %86 = vector.shape_cast %85 : vector<1x6x16xf32> to vector<6x16xf32>
    %87 = vector.shape_cast %84 : vector<6x16xf32> to vector<1x6x16xf32>
    tpu.vector_store %arg3[%c0_63, %c0_64, %c192], %87 {strides = array<i32>} : memref<2x6x256xf32, #tpu.memory_space<vmem>>, vector<1x6x16xf32>,
    %88 = vector.extract_strided_slice %35 {offsets = [0, 234], sizes = [6, 16], strides = [1, 1]} : vector<6x288xf32> to vector<6x16xf32>
    %c0_65 = arith.constant 0 : index
    %c0_66 = arith.constant 0 : index
    %c208 = arith.constant 208 : index
    %89 = vector.load %arg3[%c0_65, %c0_66, %c208] : memref<2x6x256xf32, #tpu.memory_space<vmem>>, vector<1x6x16xf32>
    %90 = vector.shape_cast %89 : vector<1x6x16xf32> to vector<6x16xf32>
    %91 = vector.shape_cast %88 : vector<6x16xf32> to vector<1x6x16xf32>
    tpu.vector_store %arg3[%c0_65, %c0_66, %c208], %91 {strides = array<i32>} : memref<2x6x256xf32, #tpu.memory_space<vmem>>, vector<1x6x16xf32>,
    %92 = vector.extract_strided_slice %35 {offsets = [0, 252], sizes = [6, 16], strides = [1, 1]} : vector<6x288xf32> to vector<6x16xf32>
    %c0_67 = arith.constant 0 : index
    %c0_68 = arith.constant 0 : index
    %c224 = arith.constant 224 : index
    %93 = vector.load %arg3[%c0_67, %c0_68, %c224] : memref<2x6x256xf32, #tpu.memory_space<vmem>>, vector<1x6x16xf32>
    %94 = vector.shape_cast %93 : vector<1x6x16xf32> to vector<6x16xf32>
    %95 = vector.shape_cast %92 : vector<6x16xf32> to vector<1x6x16xf32>
    tpu.vector_store %arg3[%c0_67, %c0_68, %c224], %95 {strides = array<i32>} : memref<2x6x256xf32, #tpu.memory_space<vmem>>, vector<1x6x16xf32>,
    %96 = vector.extract_strided_slice %35 {offsets = [0, 270], sizes = [6, 16], strides = [1, 1]} : vector<6x288xf32> to vector<6x16xf32>
    %c0_69 = arith.constant 0 : index
    %c0_70 = arith.constant 0 : index
    %c240 = arith.constant 240 : index
    %97 = vector.load %arg3[%c0_69, %c0_70, %c240] : memref<2x6x256xf32, #tpu.memory_space<vmem>>, vector<1x6x16xf32>
    %98 = vector.shape_cast %97 : vector<1x6x16xf32> to vector<6x16xf32>
    %99 = vector.shape_cast %96 : vector<6x16xf32> to vector<1x6x16xf32>
    tpu.vector_store %arg3[%c0_69, %c0_70, %c240], %99 {strides = array<i32>} : memref<2x6x256xf32, #tpu.memory_space<vmem>>, vector<1x6x16xf32>,
    %c1_71 = arith.constant 1 : index
    %c0_72 = arith.constant 0 : index
    %c0_73 = arith.constant 0 : index
    %100 = vector.load %arg1[%c1_71, %c0_72, %c0_73] : memref<2x4x342xf32, #tpu.memory_space<vmem>>, vector<1x4x288xf32>
    %101 = vector.shape_cast %100 : vector<1x4x288xf32> to vector<4x288xf32>
    %c0_74 = arith.constant 0 : index
    %c0_75 = arith.constant 0 : index
    %102 = vector.load %arg4[%c0_74, %c0_75] : memref<80x288xf32, #tpu.memory_space<vmem>>, vector<4x288xf32>
    tpu.vector_store %arg4[%c0_74, %c0_75], %101 {strides = array<i32>} : memref<80x288xf32, #tpu.memory_space<vmem>>, vector<4x288xf32>,
    %c1_76 = arith.constant 1 : index
    %c0_77 = arith.constant 0 : index
    %c1_78 = arith.constant 1 : index
    %103 = vector.load %arg1[%c1_76, %c0_77, %c1_78] : memref<2x4x342xf32, #tpu.memory_space<vmem>>, vector<1x4x288xf32>
    %104 = vector.shape_cast %103 : vector<1x4x288xf32> to vector<4x288xf32>
    %c8_79 = arith.constant 8 : index
    %c0_80 = arith.constant 0 : index
    %105 = vector.load %arg4[%c8_79, %c0_80] : memref<80x288xf32, #tpu.memory_space<vmem>>, vector<4x288xf32>
    tpu.vector_store %arg4[%c8_79, %c0_80], %104 {strides = array<i32>} : memref<80x288xf32, #tpu.memory_space<vmem>>, vector<4x288xf32>,
    %c1_81 = arith.constant 1 : index
    %c0_82 = arith.constant 0 : index
    %c2_83 = arith.constant 2 : index
    %106 = vector.load %arg1[%c1_81, %c0_82, %c2_83] : memref<2x4x342xf32, #tpu.memory_space<vmem>>, vector<1x4x288xf32>
    %107 = vector.shape_cast %106 : vector<1x4x288xf32> to vector<4x288xf32>
    %c16_84 = arith.constant 16 : index
    %c0_85 = arith.constant 0 : index
    %108 = vector.load %arg4[%c16_84, %c0_85] : memref<80x288xf32, #tpu.memory_space<vmem>>, vector<4x288xf32>
    tpu.vector_store %arg4[%c16_84, %c0_85], %107 {strides = array<i32>} : memref<80x288xf32, #tpu.memory_space<vmem>>, vector<4x288xf32>,
    %c1_86 = arith.constant 1 : index
    %c0_87 = arith.constant 0 : index
    %c18_88 = arith.constant 18 : index
    %109 = vector.load %arg1[%c1_86, %c0_87, %c18_88] : memref<2x4x342xf32, #tpu.memory_space<vmem>>, vector<1x4x288xf32>
    %110 = vector.shape_cast %109 : vector<1x4x288xf32> to vector<4x288xf32>
    %c24_89 = arith.constant 24 : index
    %c0_90 = arith.constant 0 : index
    %111 = vector.load %arg4[%c24_89, %c0_90] : memref<80x288xf32, #tpu.memory_space<vmem>>, vector<4x288xf32>
    tpu.vector_store %arg4[%c24_89, %c0_90], %110 {strides = array<i32>} : memref<80x288xf32, #tpu.memory_space<vmem>>, vector<4x288xf32>,
    %c1_91 = arith.constant 1 : index
    %c0_92 = arith.constant 0 : index
    %c19_93 = arith.constant 19 : index
    %112 = vector.load %arg1[%c1_91, %c0_92, %c19_93] : memref<2x4x342xf32, #tpu.memory_space<vmem>>, vector<1x4x288xf32>
    %113 = vector.shape_cast %112 : vector<1x4x288xf32> to vector<4x288xf32>
    %c32_94 = arith.constant 32 : index
    %c0_95 = arith.constant 0 : index
    %114 = vector.load %arg4[%c32_94, %c0_95] : memref<80x288xf32, #tpu.memory_space<vmem>>, vector<4x288xf32>
    tpu.vector_store %arg4[%c32_94, %c0_95], %113 {strides = array<i32>} : memref<80x288xf32, #tpu.memory_space<vmem>>, vector<4x288xf32>,
    %c1_96 = arith.constant 1 : index
    %c0_97 = arith.constant 0 : index
    %c20_98 = arith.constant 20 : index
    %115 = vector.load %arg1[%c1_96, %c0_97, %c20_98] : memref<2x4x342xf32, #tpu.memory_space<vmem>>, vector<1x4x288xf32>
    %116 = vector.shape_cast %115 : vector<1x4x288xf32> to vector<4x288xf32>
    %c40_99 = arith.constant 40 : index
    %c0_100 = arith.constant 0 : index
    %117 = vector.load %arg4[%c40_99, %c0_100] : memref<80x288xf32, #tpu.memory_space<vmem>>, vector<4x288xf32>
    tpu.vector_store %arg4[%c40_99, %c0_100], %116 {strides = array<i32>} : memref<80x288xf32, #tpu.memory_space<vmem>>, vector<4x288xf32>,
    %c1_101 = arith.constant 1 : index
    %c0_102 = arith.constant 0 : index
    %c36_103 = arith.constant 36 : index
    %118 = vector.load %arg1[%c1_101, %c0_102, %c36_103] : memref<2x4x342xf32, #tpu.memory_space<vmem>>, vector<1x4x288xf32>
    %119 = vector.shape_cast %118 : vector<1x4x288xf32> to vector<4x288xf32>
    %c48_104 = arith.constant 48 : index
    %c0_105 = arith.constant 0 : index
    %120 = vector.load %arg4[%c48_104, %c0_105] : memref<80x288xf32, #tpu.memory_space<vmem>>, vector<4x288xf32>
    tpu.vector_store %arg4[%c48_104, %c0_105], %119 {strides = array<i32>} : memref<80x288xf32, #tpu.memory_space<vmem>>, vector<4x288xf32>,
    %c1_106 = arith.constant 1 : index
    %c0_107 = arith.constant 0 : index
    %c37_108 = arith.constant 37 : index
    %121 = vector.load %arg1[%c1_106, %c0_107, %c37_108] : memref<2x4x342xf32, #tpu.memory_space<vmem>>, vector<1x4x288xf32>
    %122 = vector.shape_cast %121 : vector<1x4x288xf32> to vector<4x288xf32>
    %c56_109 = arith.constant 56 : index
    %c0_110 = arith.constant 0 : index
    %123 = vector.load %arg4[%c56_109, %c0_110] : memref<80x288xf32, #tpu.memory_space<vmem>>, vector<4x288xf32>
    tpu.vector_store %arg4[%c56_109, %c0_110], %122 {strides = array<i32>} : memref<80x288xf32, #tpu.memory_space<vmem>>, vector<4x288xf32>,
    %c1_111 = arith.constant 1 : index
    %c0_112 = arith.constant 0 : index
    %c38_113 = arith.constant 38 : index
    %124 = vector.load %arg1[%c1_111, %c0_112, %c38_113] : memref<2x4x342xf32, #tpu.memory_space<vmem>>, vector<1x4x288xf32>
    %125 = vector.shape_cast %124 : vector<1x4x288xf32> to vector<4x288xf32>
    %c64_114 = arith.constant 64 : index
    %c0_115 = arith.constant 0 : index
    %126 = vector.load %arg4[%c64_114, %c0_115] : memref<80x288xf32, #tpu.memory_space<vmem>>, vector<4x288xf32>
    tpu.vector_store %arg4[%c64_114, %c0_115], %125 {strides = array<i32>} : memref<80x288xf32, #tpu.memory_space<vmem>>, vector<4x288xf32>,
    %c0_116 = arith.constant 0 : index
    %c0_117 = arith.constant 0 : index
    %127 = vector.load %arg2[%c0_116, %c0_117] : memref<6x80xf32, #tpu.memory_space<vmem>>, vector<6x80xf32>
    %c0_118 = arith.constant 0 : index
    %c0_119 = arith.constant 0 : index
    %128 = vector.load %arg4[%c0_118, %c0_119] : memref<80x288xf32, #tpu.memory_space<vmem>>, vector<80x288xf32>
    %cst_120 = arith.constant dense<0.000000e+00> : vector<6x288xf32>
    %129 = tpu.matmul %127, %128, %cst_120 {dimension_numbers = #tpu.dot_dimension_numbers<[1], [0], [0], [1], [0, 0, 1, 1], [], []>, precision = #tpu.contract_precision<fp32>} : vector<6x80xf32>, vector<80x288xf32>, vector<6x288xf32> -> vector<6x288xf32>
    %130 = vector.extract_strided_slice %129 {offsets = [0, 0], sizes = [6, 16], strides = [1, 1]} : vector<6x288xf32> to vector<6x16xf32>
    %c1_121 = arith.constant 1 : index
    %c0_122 = arith.constant 0 : index
    %c0_123 = arith.constant 0 : index
    %131 = vector.load %arg3[%c1_121, %c0_122, %c0_123] : memref<2x6x256xf32, #tpu.memory_space<vmem>>, vector<1x6x16xf32>
    %132 = vector.shape_cast %131 : vector<1x6x16xf32> to vector<6x16xf32>
    %133 = vector.shape_cast %130 : vector<6x16xf32> to vector<1x6x16xf32>
    tpu.vector_store %arg3[%c1_121, %c0_122, %c0_123], %133 {strides = array<i32>} : memref<2x6x256xf32, #tpu.memory_space<vmem>>, vector<1x6x16xf32>,
    %134 = vector.extract_strided_slice %129 {offsets = [0, 18], sizes = [6, 16], strides = [1, 1]} : vector<6x288xf32> to vector<6x16xf32>
    %c1_124 = arith.constant 1 : index
    %c0_125 = arith.constant 0 : index
    %c16_126 = arith.constant 16 : index
    %135 = vector.load %arg3[%c1_124, %c0_125, %c16_126] : memref<2x6x256xf32, #tpu.memory_space<vmem>>, vector<1x6x16xf32>
    %136 = vector.shape_cast %135 : vector<1x6x16xf32> to vector<6x16xf32>
    %137 = vector.shape_cast %134 : vector<6x16xf32> to vector<1x6x16xf32>
    tpu.vector_store %arg3[%c1_124, %c0_125, %c16_126], %137 {strides = array<i32>} : memref<2x6x256xf32, #tpu.memory_space<vmem>>, vector<1x6x16xf32>,
    %138 = vector.extract_strided_slice %129 {offsets = [0, 36], sizes = [6, 16], strides = [1, 1]} : vector<6x288xf32> to vector<6x16xf32>
    %c1_127 = arith.constant 1 : index
    %c0_128 = arith.constant 0 : index
    %c32_129 = arith.constant 32 : index
    %139 = vector.load %arg3[%c1_127, %c0_128, %c32_129] : memref<2x6x256xf32, #tpu.memory_space<vmem>>, vector<1x6x16xf32>
    %140 = vector.shape_cast %139 : vector<1x6x16xf32> to vector<6x16xf32>
    %141 = vector.shape_cast %138 : vector<6x16xf32> to vector<1x6x16xf32>
    tpu.vector_store %arg3[%c1_127, %c0_128, %c32_129], %141 {strides = array<i32>} : memref<2x6x256xf32, #tpu.memory_space<vmem>>, vector<1x6x16xf32>,
    %142 = vector.extract_strided_slice %129 {offsets = [0, 54], sizes = [6, 16], strides = [1, 1]} : vector<6x288xf32> to vector<6x16xf32>
    %c1_130 = arith.constant 1 : index
    %c0_131 = arith.constant 0 : index
    %c48_132 = arith.constant 48 : index
    %143 = vector.load %arg3[%c1_130, %c0_131, %c48_132] : memref<2x6x256xf32, #tpu.memory_space<vmem>>, vector<1x6x16xf32>
    %144 = vector.shape_cast %143 : vector<1x6x16xf32> to vector<6x16xf32>
    %145 = vector.shape_cast %142 : vector<6x16xf32> to vector<1x6x16xf32>
    tpu.vector_store %arg3[%c1_130, %c0_131, %c48_132], %145 {strides = array<i32>} : memref<2x6x256xf32, #tpu.memory_space<vmem>>, vector<1x6x16xf32>,
    %146 = vector.extract_strided_slice %129 {offsets = [0, 72], sizes = [6, 16], strides = [1, 1]} : vector<6x288xf32> to vector<6x16xf32>
    %c1_133 = arith.constant 1 : index
    %c0_134 = arith.constant 0 : index
    %c64_135 = arith.constant 64 : index
    %147 = vector.load %arg3[%c1_133, %c0_134, %c64_135] : memref<2x6x256xf32, #tpu.memory_space<vmem>>, vector<1x6x16xf32>
    %148 = vector.shape_cast %147 : vector<1x6x16xf32> to vector<6x16xf32>
    %149 = vector.shape_cast %146 : vector<6x16xf32> to vector<1x6x16xf32>
    tpu.vector_store %arg3[%c1_133, %c0_134, %c64_135], %149 {strides = array<i32>} : memref<2x6x256xf32, #tpu.memory_space<vmem>>, vector<1x6x16xf32>,
    %150 = vector.extract_strided_slice %129 {offsets = [0, 90], sizes = [6, 16], strides = [1, 1]} : vector<6x288xf32> to vector<6x16xf32>
    %c1_136 = arith.constant 1 : index
    %c0_137 = arith.constant 0 : index
    %c80_138 = arith.constant 80 : index
    %151 = vector.load %arg3[%c1_136, %c0_137, %c80_138] : memref<2x6x256xf32, #tpu.memory_space<vmem>>, vector<1x6x16xf32>
    %152 = vector.shape_cast %151 : vector<1x6x16xf32> to vector<6x16xf32>
    %153 = vector.shape_cast %150 : vector<6x16xf32> to vector<1x6x16xf32>
    tpu.vector_store %arg3[%c1_136, %c0_137, %c80_138], %153 {strides = array<i32>} : memref<2x6x256xf32, #tpu.memory_space<vmem>>, vector<1x6x16xf32>,
    %154 = vector.extract_strided_slice %129 {offsets = [0, 108], sizes = [6, 16], strides = [1, 1]} : vector<6x288xf32> to vector<6x16xf32>
    %c1_139 = arith.constant 1 : index
    %c0_140 = arith.constant 0 : index
    %c96_141 = arith.constant 96 : index
    %155 = vector.load %arg3[%c1_139, %c0_140, %c96_141] : memref<2x6x256xf32, #tpu.memory_space<vmem>>, vector<1x6x16xf32>
    %156 = vector.shape_cast %155 : vector<1x6x16xf32> to vector<6x16xf32>
    %157 = vector.shape_cast %154 : vector<6x16xf32> to vector<1x6x16xf32>
    tpu.vector_store %arg3[%c1_139, %c0_140, %c96_141], %157 {strides = array<i32>} : memref<2x6x256xf32, #tpu.memory_space<vmem>>, vector<1x6x16xf32>,
    %158 = vector.extract_strided_slice %129 {offsets = [0, 126], sizes = [6, 16], strides = [1, 1]} : vector<6x288xf32> to vector<6x16xf32>
    %c1_142 = arith.constant 1 : index
    %c0_143 = arith.constant 0 : index
    %c112_144 = arith.constant 112 : index
    %159 = vector.load %arg3[%c1_142, %c0_143, %c112_144] : memref<2x6x256xf32, #tpu.memory_space<vmem>>, vector<1x6x16xf32>
    %160 = vector.shape_cast %159 : vector<1x6x16xf32> to vector<6x16xf32>
    %161 = vector.shape_cast %158 : vector<6x16xf32> to vector<1x6x16xf32>
    tpu.vector_store %arg3[%c1_142, %c0_143, %c112_144], %161 {strides = array<i32>} : memref<2x6x256xf32, #tpu.memory_space<vmem>>, vector<1x6x16xf32>,
    %162 = vector.extract_strided_slice %129 {offsets = [0, 144], sizes = [6, 16], strides = [1, 1]} : vector<6x288xf32> to vector<6x16xf32>
    %c1_145 = arith.constant 1 : index
    %c0_146 = arith.constant 0 : index
    %c128_147 = arith.constant 128 : index
    %163 = vector.load %arg3[%c1_145, %c0_146, %c128_147] : memref<2x6x256xf32, #tpu.memory_space<vmem>>, vector<1x6x16xf32>
    %164 = vector.shape_cast %163 : vector<1x6x16xf32> to vector<6x16xf32>
    %165 = vector.shape_cast %162 : vector<6x16xf32> to vector<1x6x16xf32>
    tpu.vector_store %arg3[%c1_145, %c0_146, %c128_147], %165 {strides = array<i32>} : memref<2x6x256xf32, #tpu.memory_space<vmem>>, vector<1x6x16xf32>,
    %166 = vector.extract_strided_slice %129 {offsets = [0, 162], sizes = [6, 16], strides = [1, 1]} : vector<6x288xf32> to vector<6x16xf32>
    %c1_148 = arith.constant 1 : index
    %c0_149 = arith.constant 0 : index
    %c144_150 = arith.constant 144 : index
    %167 = vector.load %arg3[%c1_148, %c0_149, %c144_150] : memref<2x6x256xf32, #tpu.memory_space<vmem>>, vector<1x6x16xf32>
    %168 = vector.shape_cast %167 : vector<1x6x16xf32> to vector<6x16xf32>
    %169 = vector.shape_cast %166 : vector<6x16xf32> to vector<1x6x16xf32>
    tpu.vector_store %arg3[%c1_148, %c0_149, %c144_150], %169 {strides = array<i32>} : memref<2x6x256xf32, #tpu.memory_space<vmem>>, vector<1x6x16xf32>,
    %170 = vector.extract_strided_slice %129 {offsets = [0, 180], sizes = [6, 16], strides = [1, 1]} : vector<6x288xf32> to vector<6x16xf32>
    %c1_151 = arith.constant 1 : index
    %c0_152 = arith.constant 0 : index
    %c160_153 = arith.constant 160 : index
    %171 = vector.load %arg3[%c1_151, %c0_152, %c160_153] : memref<2x6x256xf32, #tpu.memory_space<vmem>>, vector<1x6x16xf32>
    %172 = vector.shape_cast %171 : vector<1x6x16xf32> to vector<6x16xf32>
    %173 = vector.shape_cast %170 : vector<6x16xf32> to vector<1x6x16xf32>
    tpu.vector_store %arg3[%c1_151, %c0_152, %c160_153], %173 {strides = array<i32>} : memref<2x6x256xf32, #tpu.memory_space<vmem>>, vector<1x6x16xf32>,
    %174 = vector.extract_strided_slice %129 {offsets = [0, 198], sizes = [6, 16], strides = [1, 1]} : vector<6x288xf32> to vector<6x16xf32>
    %c1_154 = arith.constant 1 : index
    %c0_155 = arith.constant 0 : index
    %c176_156 = arith.constant 176 : index
    %175 = vector.load %arg3[%c1_154, %c0_155, %c176_156] : memref<2x6x256xf32, #tpu.memory_space<vmem>>, vector<1x6x16xf32>
    %176 = vector.shape_cast %175 : vector<1x6x16xf32> to vector<6x16xf32>
    %177 = vector.shape_cast %174 : vector<6x16xf32> to vector<1x6x16xf32>
    tpu.vector_store %arg3[%c1_154, %c0_155, %c176_156], %177 {strides = array<i32>} : memref<2x6x256xf32, #tpu.memory_space<vmem>>, vector<1x6x16xf32>,
    %178 = vector.extract_strided_slice %129 {offsets = [0, 216], sizes = [6, 16], strides = [1, 1]} : vector<6x288xf32> to vector<6x16xf32>
    %c1_157 = arith.constant 1 : index
    %c0_158 = arith.constant 0 : index
    %c192_159 = arith.constant 192 : index
    %179 = vector.load %arg3[%c1_157, %c0_158, %c192_159] : memref<2x6x256xf32, #tpu.memory_space<vmem>>, vector<1x6x16xf32>
    %180 = vector.shape_cast %179 : vector<1x6x16xf32> to vector<6x16xf32>
    %181 = vector.shape_cast %178 : vector<6x16xf32> to vector<1x6x16xf32>
    tpu.vector_store %arg3[%c1_157, %c0_158, %c192_159], %181 {strides = array<i32>} : memref<2x6x256xf32, #tpu.memory_space<vmem>>, vector<1x6x16xf32>,
    %182 = vector.extract_strided_slice %129 {offsets = [0, 234], sizes = [6, 16], strides = [1, 1]} : vector<6x288xf32> to vector<6x16xf32>
    %c1_160 = arith.constant 1 : index
    %c0_161 = arith.constant 0 : index
    %c208_162 = arith.constant 208 : index
    %183 = vector.load %arg3[%c1_160, %c0_161, %c208_162] : memref<2x6x256xf32, #tpu.memory_space<vmem>>, vector<1x6x16xf32>
    %184 = vector.shape_cast %183 : vector<1x6x16xf32> to vector<6x16xf32>
    %185 = vector.shape_cast %182 : vector<6x16xf32> to vector<1x6x16xf32>
    tpu.vector_store %arg3[%c1_160, %c0_161, %c208_162], %185 {strides = array<i32>} : memref<2x6x256xf32, #tpu.memory_space<vmem>>, vector<1x6x16xf32>,
    %186 = vector.extract_strided_slice %129 {offsets = [0, 252], sizes = [6, 16], strides = [1, 1]} : vector<6x288xf32> to vector<6x16xf32>
    %c1_163 = arith.constant 1 : index
    %c0_164 = arith.constant 0 : index
    %c224_165 = arith.constant 224 : index
    %187 = vector.load %arg3[%c1_163, %c0_164, %c224_165] : memref<2x6x256xf32, #tpu.memory_space<vmem>>, vector<1x6x16xf32>
    %188 = vector.shape_cast %187 : vector<1x6x16xf32> to vector<6x16xf32>
    %189 = vector.shape_cast %186 : vector<6x16xf32> to vector<1x6x16xf32>
    tpu.vector_store %arg3[%c1_163, %c0_164, %c224_165], %189 {strides = array<i32>} : memref<2x6x256xf32, #tpu.memory_space<vmem>>, vector<1x6x16xf32>,
    %190 = vector.extract_strided_slice %129 {offsets = [0, 270], sizes = [6, 16], strides = [1, 1]} : vector<6x288xf32> to vector<6x16xf32>
    %c1_166 = arith.constant 1 : index
    %c0_167 = arith.constant 0 : index
    %c240_168 = arith.constant 240 : index
    %191 = vector.load %arg3[%c1_166, %c0_167, %c240_168] : memref<2x6x256xf32, #tpu.memory_space<vmem>>, vector<1x6x16xf32>
    %192 = vector.shape_cast %191 : vector<1x6x16xf32> to vector<6x16xf32>
    %193 = vector.shape_cast %190 : vector<6x16xf32> to vector<1x6x16xf32>
    tpu.vector_store %arg3[%c1_166, %c0_167, %c240_168], %193 {strides = array<i32>} : memref<2x6x256xf32, #tpu.memory_space<vmem>>, vector<1x6x16xf32>,
    return
  }
  func.func @transform_0(%arg0: i32) -> (i32, i32, i32) {
    %c0_i32 = arith.constant 0 : i32
    %c0_i32_0 = arith.constant 0 : i32
    %c0_i32_1 = arith.constant 0 : i32
    return %arg0, %c0_i32, %c0_i32_0 : i32, i32, i32
  }
  func.func @transform_1(%arg0: i32) -> (i32, i32) {
    %c0_i32 = arith.constant 0 : i32
    %c0_i32_0 = arith.constant 0 : i32
    %c0_i32_1 = arith.constant 0 : i32
    return %c0_i32, %c0_i32_0 : i32, i32
  }
  func.func @transform_2(%arg0: i32) -> (i32, i32, i32) {
    %c0_i32 = arith.constant 0 : i32
    %c0_i32_0 = arith.constant 0 : i32
    %c0_i32_1 = arith.constant 0 : i32
    return %arg0, %c0_i32, %c0_i32_0 : i32, i32, i32
  }
}

</mosaic_0001>

<bundles_post_ra>
// kernel: conv_basis_forward.1
= control target key start
LH: loop header
LB: loop body
LE: loop exit
PB: predicated region body
PF: predicated region fallthrough
CT: control target
= control target key end

     0   :  { %s2638_s9 = smov 0   ;;  %s4056_s0 = inlined_call_operand.vmem [shape: f32[4,4,342], index: 0, kind: input, shape index: {}]   ;;  %s4057_s1 = inlined_call_operand.vmem [shape: f32[6,80], index: 1, kind: input, shape index: {}]   ;;  %s4058_s2 = inlined_call_operand.vmem [shape: f32[4,6,256], index: 2, kind: output, shape index: {}]  }
   0x1 LB: > { %s2506_s10 = sadd.s32 4294967295, %s2599_s9   ;;  %p2510_p0 = scmp.ge.s32.totalorder %s2599_s9, 1  ;;  %s2599_s9 = sphi %s2638_s9, %s12_s9  }
   0x2   : > { %p114_p1 = scmp.lt.s32.totalorder %s2599_s9, 3 }
   0x4   : > { %p115_p2 = pnand %p2510_p0, %p114_p1 }
   0x6   : > { %118 = sbr.rel (%p115_p2) target bundleno = 676 (0x2a4), region = 28 }
   0xb   : > { %s2511_s11 = sshll.u32 %s2506_s10, 1  ;;  %s2601_s16 = smov 127   ;;  %v2609_v56 = vmov 0.0   ;;  %vm257_vm0 = vcmask 1039360   ;;  %vm195_vm1 = vcmask 261120   ;;  %vm239_vm2 = vcmask 257024  }
   0xc   : > { %p139_p3 = scmp.lt.s32.totalorder %s2511_s11, 3  ;;  %s2602_s17 = smov 126   ;;  %197 = vst [vmem:[#allocation2 + $0x18] sm:$0xff] %v2609_v56  ;;  %vm282_vm3 = vcmask 1031168   ;;  %vm307_vm4 = vcmask 900096   ;;  %vm332_vm5 = vcmask 891904  }
   0xd   : > { %s2603_s18 = smov 110   ;;  %s2604_s19 = smov 109   ;;  %193 = vst [vmem:[#allocation2] sm:$0xff] %v2609_v56  ;;  %vm382_vm6 = vcmask 752640   ;;  %vm357_vm7 = vcmask 883712   ;;  %vm407_vm9 = vcmask 744448  }
   0xe   : > { %s4122_s11 = smov (!%p139_p3, %s2511_s11), 3  ;;  %s2605_s20 = smov 108   ;;  %194 = vst [vmem:[#allocation2 + $0x8] sm:$0xff] %v2609_v56  ;;  %vm432_vm10 = vcmask 736256   ;;  %vm472_vm11 = vcmask 654336   ;;  %vm1265_vm12 = vcmask 128000  }
   0xf   : > { %s2554_s12 = smul.u32 12, %s4122_s11  ;;  %s2606_s21 = smov 92   ;;  %198 = vst [vmem:[#allocation2 + $0x20] sm:$0xff] %v2609_v56  ;;  %vm1271_vm13 = vcmask 259200   ;;  %vm1276_vm14 = vcmask 390400   ;;  %vm1281_vm15 = vcmask 521600  }
  0x10   : > { %s2607_s22 = smov 91   ;;  %s2608_s23 = smov 90   ;;  %200 = vst [vmem:[#allocation2 + $0x30] sm:$0xff] %v2609_v56 }
  0x11   : > { %s2652_s15 = scalar_lea.vmem %s4056_s0, %s2554_s12  ;;  %201 = vst [vmem:[#allocation2 + $0x38] sm:$0xff] %v2609_v56  ;;  %s2553_s28 = sshll.u32 %s4122_s11, 4 }
  0x12   : > { %v2655_v0 = vld [vmem:[%s2652_s15] sm:$0xff]  ;;  %v225_v1 = vld [vmem:[%s2652_s15 + $0x8] sm:$0xf]  ;;  %v2704_v34 = vld [vmem:[%s2652_s15 + $0xc] sm:$0xff]  ;;  %203 = vst [vmem:[#allocation2 + $0x48] sm:$0xff] %v2609_v56  ;;  %s3873_s3 = scalar_lea.vmem %s4058_s2, %s2553_s28  ;;  %s2611_s4 = smov 122  }
  0x13   : > { %228 = vst [vmem:[#allocation1] ss:$2 sm:$0xff] %v2655_v0  ;;  %v242_v2 = vld [vmem:[%s2652_s15 + $0x8] sm:$0xf]  ;;  %v2518_v35 = vld [vmem:[%s2652_s15 + $0x14] sm:$0xf] }
  0x14   : > { %230 = vst [vmem:[#allocation1 + $0x10] ss:$2 sm:$0xff] %v225_v1  ;;  %v267_v6 = vld [vmem:[%s2652_s15 + $0x8] sm:$0xf]  ;;  %v2520_v39 = vld [vmem:[%s2652_s15 + $0x14] sm:$0xf] }
  0x15   : > { %v292_v10 = vld [vmem:[%s2652_s15 + $0x8] sm:$0xf]  ;;  %v2522_v43 = vld [vmem:[%s2652_s15 + $0x14] sm:$0xf]  ;;  %204 = vst [vmem:[#allocation2 + $0x50] sm:$0xff] %v2609_v56  ;;  %s2612_s5 = smov 124  }
  0x16   : > { %v317_v14 = vld [vmem:[%s2652_s15 + $0x8] sm:$0xf]  ;;  %v2524_v47 = vld [vmem:[%s2652_s15 + $0x14] sm:$0xf]  ;;  %206 = vst [vmem:[#allocation2 + $0x60] sm:$0xff] %v2609_v56  ;;  %s2613_s6 = smov 116  }
  0x17   : > { %v342_v18 = vld [vmem:[%s2652_s15 + $0x8] sm:$0xf]  ;;  %v2526_v51 = vld [vmem:[%s2652_s15 + $0x14] sm:$0xf]  ;;  %207 = vst [vmem:[#allocation2 + $0x68] sm:$0xff] %v2609_v56  ;;  %s2614_s7 = smov 118  }
  0x18   : > { %v367_v22 = vld [vmem:[%s2652_s15 + $0x8] sm:$0xf]  ;;  %v2528_v57 = vld [vmem:[%s2652_s15 + $0x14] sm:$0xf]  ;;  %209 = vst [vmem:[#allocation2 + $0x78] sm:$0xff] %v2609_v56  ;;  %s2615_s8 = smov 120  }
  0x19   : > { %v392_v26 = vld [vmem:[%s2652_s15 + $0x8] sm:$0xf]  ;;  %v2530_v62 = vld [vmem:[%s2652_s15 + $0x14] sm:$0xf]  ;;  %210 = vst [vmem:[#allocation2 + $0x80] sm:$0xff] %v2609_v56  ;;  %s2616_s10 = smov 112  }
  0x1a   : > { %v2660_v3 = vld.sshfl [vmem:[#allocation1] sm:$0xff pattern:$0x75316420]  ;;  %v2662_v4 = vld.sshfl [vmem:[#allocation1 + $0x8] sm:$0xff pattern:$0x75316420] }
  0x1b   : > { %245 = vst [vmem:[#allocation1] ss:$2 sm:$0xff] %v2655_v0  ;;  %v2665_v5 = vld.sshfl [vmem:[#allocation1 + $0x10] sm:$0xff pattern:$0x75316420]  ;;  %s2617_s11 = smov 114  }
  0x1c   : > { %247 = vst [vmem:[#allocation1 + $0x10] ss:$2 sm:$0xff] %v242_v2  ;;  %v417_v30 = vld [vmem:[%s2652_s15 + $0x8] sm:$0xf]  ;;  %s2618_s12 = smov 106   ;;  %s2619_s13 = smov 100  }
  0x1d   : > { %212 = vst [vmem:[#allocation2 + $0x90] sm:$0xff] %v2609_v56  ;;  %s2620_s14 = smov 102  }
  0x1e   : > { %213 = vst [vmem:[#allocation2 + $0x98] sm:$0xff] %v2609_v56 }
  0x1f   : > { %215 = vst [vmem:[#allocation2 + $0xa8] sm:$0xff] %v2609_v56 }
  0x20   : > { %216 = vst [vmem:[#allocation2 + $0xb0] sm:$0xff] %v2609_v56 }
  0x21   : > { %218 = vst [vmem:[#allocation2 + $0xc0] sm:$0xff] %v2609_v56 }
  0x22   : > { %v249_v7 = vld.sshfl [vmem:[#allocation1 + $0x8] sm:$0xff pattern:$0x75316420]  ;;  %v248_v8 = vld.sshfl [vmem:[#allocation1] sm:$0xff pattern:$0x75316420] }
  0x23   : > { %253 = vrot.lane.b32.xlu2 %v249_v7, %s2601_s16  ;;  %251 = vrot.lane.b32.xlu1 %v248_v8, %s2601_s16  ;;  %270 = vst [vmem:[#allocation1] ss:$2 sm:$0xff] %v2655_v0  ;;  %v2671_v9 = vld.sshfl [vmem:[#allocation1 + $0x10] sm:$0xff pattern:$0x75316420] }
  0x24   : > { %272 = vst [vmem:[#allocation1 + $0x10] ss:$2 sm:$0xff] %v267_v6 }
  0x25   : > { %219 = vst [vmem:[#allocation2 + $0xc8] sm:$0xff] %v2609_v56 }
  0x26   : > { %208 = vst.msk [vmem:[#allocation2 + $0x70] sm:$0xff] %vm195_vm1, %v2609_v56 }
  0x27   : > { %196 = vst.msk [vmem:[#allocation2 + $0x10] sm:$0xff] %vm195_vm1, %v2609_v56 }
  0x28   : > { %199 = vst.msk [vmem:[#allocation2 + $0x28] sm:$0xff] %vm195_vm1, %v2609_v56 }
  0x29   : > { %202 = vst.msk [vmem:[#allocation2 + $0x40] sm:$0xff] %vm195_vm1, %v2609_v56 }
  0x2a   : > { %v274_v11 = vld.sshfl [vmem:[#allocation1 + $0x8] sm:$0xff pattern:$0x75316420]  ;;  %v273_v12 = vld.sshfl [vmem:[#allocation1] sm:$0xff pattern:$0x75316420] }
  0x2b   : > { %278 = vrot.lane.b32.xlu2 %v274_v11, %s2602_s17  ;;  %v2675_v13 = vld.sshfl [vmem:[#allocation1 + $0x10] sm:$0xff pattern:$0x75316420]  ;;  %276 = vrot.lane.b32.xlu1 %v273_v12, %s2602_s17  ;;  %295 = vst [vmem:[#allocation1] ss:$2 sm:$0xff] %v2655_v0 }
  0x2c   : > { %297 = vst [vmem:[#allocation1 + $0x10] ss:$2 sm:$0xff] %v292_v10 }
  0x2d   : > { %205 = vst.msk [vmem:[#allocation2 + $0x58] sm:$0xff] %vm195_vm1, %v2609_v56 }
  0x2e   : > { %211 = vst.msk [vmem:[#allocation2 + $0x88] sm:$0xff] %vm195_vm1, %v2609_v56 }
  0x2f   : > { %214 = vst.msk [vmem:[#allocation2 + $0xa0] sm:$0xff] %vm195_vm1, %v2609_v56 }
  0x30   : > { %217 = vst.msk [vmem:[#allocation2 + $0xb8] sm:$0xff] %vm195_vm1, %v2609_v56 }
  0x31   : > { %220 = vst.msk [vmem:[#allocation2 + $0xd0] sm:$0xff] %vm195_vm1, %v2609_v56 }
  0x32   : > { %v299_v15 = vld.sshfl [vmem:[#allocation1 + $0x8] sm:$0xff pattern:$0x75316420]  ;;  %v298_v16 = vld.sshfl [vmem:[#allocation1] sm:$0xff pattern:$0x75316420] }
  0x33   : > { %v300_v17 = vld.sshfl [vmem:[#allocation1 + $0x10] sm:$0xff pattern:$0x75316420]  ;;  %303 = vrot.lane.b32.xlu2 %v299_v15, %s2603_s18  ;;  %301 = vrot.lane.b32.xlu1 %v298_v16, %s2603_s18  ;;  %320 = vst [vmem:[#allocation1] ss:$2 sm:$0xff] %v2655_v0 }
  0x34   : > { %305 = vrot.lane.b32.xlu0 %v300_v17, %s2603_s18  ;;  %322 = vst [vmem:[#allocation1 + $0x10] ss:$2 sm:$0xff] %v317_v14 }
  0x35   : > { %237 = vst [vmem:[#allocation2] sm:$0xf] %v2660_v3 }
  0x36   : > { %238 = vst [vmem:[#allocation2 + $0x8] sm:$0xf] %v2662_v4  ;;  %v2532_v4 = vld [vmem:[%s2652_s15 + $0x14] sm:$0xf] }
  0x37   : > { %240 = vst.msk [vmem:[#allocation2 + $0x10] sm:$0xf] %vm239_vm2, %v2665_v5 }
  0x3a   : > { %v324_v19 = vld.sshfl [vmem:[#allocation1 + $0x8] sm:$0xff pattern:$0x75316420]  ;;  %v323_v20 = vld.sshfl [vmem:[#allocation1] sm:$0xff pattern:$0x75316420] }
  0x3b   : > { %326 = vrot.lane.b32.xlu2 %v323_v20, %s2604_s19  ;;  %v325_v21 = vld.sshfl [vmem:[#allocation1 + $0x10] sm:$0xff pattern:$0x75316420]  ;;  %345 = vst [vmem:[#allocation1] ss:$2 sm:$0xff] %v2655_v0 }
  0x3c   : > { %328 = vrot.lane.b32.xlu0 %v324_v19, %s2604_s19  ;;  %347 = vst [vmem:[#allocation1 + $0x10] ss:$2 sm:$0xff] %v342_v18 }
  0x42   : > { %v349_v23 = vld.sshfl [vmem:[#allocation1 + $0x8] sm:$0xff pattern:$0x75316420]  ;;  %v348_v24 = vld.sshfl [vmem:[#allocation1] sm:$0xff pattern:$0x75316420] }
  0x43   : > { %330 = vrot.lane.b32.xlu2 %v325_v21, %s2604_s19  ;;  %353 = vrot.lane.b32.xlu1 %v349_v23, %s2605_s20  ;;  %v350_v25 = vld.sshfl [vmem:[#allocation1 + $0x10] sm:$0xff pattern:$0x75316420]  ;;  %370 = vst [vmem:[#allocation1] ss:$2 sm:$0xff] %v2655_v0 }
  0x44   : > { %351 = vrot.lane.b32.xlu0 %v348_v24, %s2605_s20  ;;  %372 = vst [vmem:[#allocation1 + $0x10] ss:$2 sm:$0xff] %v367_v22 }
  0x4a   : > { %v373_v27 = vld.sshfl [vmem:[#allocation1] sm:$0xff pattern:$0x75316420]  ;;  %v374_v28 = vld.sshfl [vmem:[#allocation1 + $0x8] sm:$0xff pattern:$0x75316420] }
  0x4b   : > { %355 = vrot.lane.b32.xlu1 %v350_v25, %s2605_s20  ;;  %v375_v29 = vld.sshfl [vmem:[#allocation1 + $0x10] sm:$0xff pattern:$0x75316420]  ;;  %376 = vrot.lane.b32.xlu2 %v373_v27, %s2606_s21  ;;  %395 = vst [vmem:[#allocation1] ss:$2 sm:$0xff] %v2655_v0 }
  0x4c   : > { %380 = vrot.lane.b32.xlu0 %v375_v29, %s2606_s21  ;;  %397 = vst [vmem:[#allocation1 + $0x10] ss:$2 sm:$0xff] %v392_v26  ;;  %v2534_v27 = vld [vmem:[%s2652_s15 + $0x14] sm:$0xf]  ;;  %s2621_s15 = smov 104  }
  0x52   : > { %v398_v31 = vld.sshfl [vmem:[#allocation1] sm:$0xff pattern:$0x75316420]  ;;  %v399_v32 = vld.sshfl [vmem:[#allocation1 + $0x8] sm:$0xff pattern:$0x75316420] }
  0x53   : > { %v400_v33 = vld.sshfl [vmem:[#allocation1 + $0x10] sm:$0xff pattern:$0x75316420]  ;;  %378 = vrot.lane.b32.xlu2 %v374_v28, %s2606_s21  ;;  %401 = vrot.lane.b32.xlu1 %v398_v31, %s2607_s22  ;;  %420 = vst [vmem:[#allocation1] ss:$2 sm:$0xff] %v2655_v0 }
  0x54   : > { %405 = vrot.lane.b32.xlu0 %v400_v33, %s2607_s22  ;;  %422 = vst [vmem:[#allocation1 + $0x10] ss:$2 sm:$0xff] %v417_v30 }
  0x5a   : > { %v423_v36 = vld.sshfl [vmem:[#allocation1] sm:$0xff pattern:$0x75316420]  ;;  %v424_v37 = vld.sshfl [vmem:[#allocation1 + $0x8] sm:$0xff pattern:$0x75316420] }
  0x5b   : > { %255 = vrot.lane.b32.xlu2 %v2671_v9, %s2601_s16  ;;  %403 = vrot.lane.b32.xlu1 %v399_v32, %s2607_s22  ;;  %1350 = vst [vmem:[#allocation1] ss:$2 sm:$0xff] %v2704_v34  ;;  %v425_v38 = vld.sshfl [vmem:[#allocation1 + $0x10] sm:$0xff pattern:$0x75316420] }
  0x5c   : > { %426 = vrot.lane.b32.xlu0 %v423_v36, %s2608_s23  ;;  %1352 = vst [vmem:[#allocation1 + $0x10] ss:$2 sm:$0xff] %v2518_v35 }
  0x62   : > { %v2713_v40 = vld.sshfl [vmem:[#allocation1] sm:$0xff pattern:$0x75316420]  ;;  %v2715_v41 = vld.sshfl [vmem:[#allocation1 + $0x8] sm:$0xff pattern:$0x75316420] }
  0x63   : > { %280 = vrot.lane.b32.xlu1 %v2675_v13, %s2602_s17  ;;  %1366 = vst [vmem:[#allocation1] ss:$2 sm:$0xff] %v2704_v34  ;;  %v2720_v42 = vld.sshfl [vmem:[#allocation1 + $0x10] sm:$0xff pattern:$0x75316420] }
  0x64   : > { %428 = vrot.lane.b32.xlu0 %v424_v37, %s2608_s23  ;;  %1368 = vst [vmem:[#allocation1 + $0x10] ss:$2 sm:$0xff] %v2520_v39 }
  0x6a   : > { %v2724_v44 = vld.sshfl [vmem:[#allocation1] sm:$0xff pattern:$0x75316420]  ;;  %v2726_v45 = vld.sshfl [vmem:[#allocation1 + $0x8] sm:$0xff pattern:$0x75316420] }
  0x6b   : > { %1390 = vst [vmem:[#allocation1] ss:$2 sm:$0xff] %v2704_v34  ;;  %v2729_v46 = vld.sshfl [vmem:[#allocation1 + $0x10] sm:$0xff pattern:$0x75316420] }
  0x6c   : > { %1392 = vst [vmem:[#allocation1 + $0x10] ss:$2 sm:$0xff] %v2522_v43  ;;  %430 = vrot.lane.b32.xlu0 %v425_v38, %s2608_s23  ;;  %v152_v38 = vlaneseq }
  0x6e   : > { %v153_v39 = vshrl.u32 %v152_v38, 7 }
  0x72   : > { %v2733_v48 = vld.sshfl [vmem:[#allocation1] sm:$0xff pattern:$0x75316420]  ;;  %v2735_v49 = vld.sshfl [vmem:[#allocation1 + $0x8] sm:$0xff pattern:$0x75316420] }
  0x73   : > { %1414 = vst [vmem:[#allocation1] ss:$2 sm:$0xff] %v2704_v34  ;;  %v2738_v50 = vld.sshfl [vmem:[#allocation1 + $0x10] sm:$0xff pattern:$0x75316420] }
  0x74   : > { %1416 = vst [vmem:[#allocation1 + $0x10] ss:$2 sm:$0xff] %v2524_v47 }
  0x7a   : > { %v2741_v52 = vld.sshfl [vmem:[#allocation1] sm:$0xff pattern:$0x75316420]  ;;  %v2743_v53 = vld.sshfl [vmem:[#allocation1 + $0x8] sm:$0xff pattern:$0x75316420] }
  0x7b   : > { %v2745_v54 = vld.sshfl [vmem:[#allocation1 + $0x10] sm:$0xff pattern:$0x75316420]  ;;  %1438 = vst [vmem:[#allocation1] ss:$2 sm:$0xff] %v2704_v34 }
  0x7c   : > { %1440 = vst [vmem:[#allocation1 + $0x10] ss:$2 sm:$0xff] %v2526_v51 }
  0x7d   : > { %v2748_v55 = vpop.permute.xlu2 %253 }
  0x82   : > { %v1442_v58 = vld.sshfl [vmem:[#allocation1 + $0x8] sm:$0xff pattern:$0x75316420]  ;;  %v1441_v59 = vld.sshfl [vmem:[#allocation1] sm:$0xff pattern:$0x75316420] }
  0x83   : > { %v2756_v60 = vld.sshfl [vmem:[#allocation1 + $0x10] sm:$0xff pattern:$0x75316420]  ;;  %1446 = vrot.lane.b32.xlu0 %v1442_v58, %s2604_s19  ;;  %1444 = vrot.lane.b32.xlu2 %v1441_v59, %s2604_s19  ;;  %1462 = vst [vmem:[#allocation1] ss:$2 sm:$0xff] %v2704_v34  ;;  %v2882_v59 = vld [vmem:[#allocation2] sm:$0xff] }
  0x84   : > { %1464 = vst [vmem:[#allocation1 + $0x10] ss:$2 sm:$0xff] %v2528_v57 }
  0x85   : > { %v2761_v61 = vpop.permute.xlu2 %278  ;;  %1359 = vst [vmem:[#allocation2] sm:$0xf] %v2713_v40 }
  0x8a   : > { %v1466_v63 = vld.sshfl [vmem:[#allocation1 + $0x8] sm:$0xff pattern:$0x75316420]  ;;  %v1465_v0 = vld.sshfl [vmem:[#allocation1] sm:$0xff pattern:$0x75316420] }
  0x8b   : > { %v2769_v1 = vld.sshfl [vmem:[#allocation1 + $0x10] sm:$0xff pattern:$0x75316420]  ;;  %1470 = vrot.lane.b32.xlu1 %v1466_v63, %s2605_s20  ;;  %1468 = vrot.lane.b32.xlu0 %v1465_v0, %s2605_s20  ;;  %1486 = vst [vmem:[#allocation1] ss:$2 sm:$0xff] %v2704_v34 }
  0x8c   : > { %1488 = vst [vmem:[#allocation1 + $0x10] ss:$2 sm:$0xff] %v2530_v62 }
  0x8d   : > { %v304_v2 = vpop.permute.xlu2 %303 }
  0x92   : > { %v1490_v6 = vld.sshfl [vmem:[#allocation1 + $0x8] sm:$0xff pattern:$0x75316420]  ;;  %v1489_v7 = vld.sshfl [vmem:[#allocation1] sm:$0xff pattern:$0x75316420] }
  0x93   : > { %1494 = vrot.lane.b32.xlu2 %v1490_v6, %s2606_s21  ;;  %1492 = vrot.lane.b32.xlu1 %v1489_v7, %s2606_s21  ;;  %1510 = vst [vmem:[#allocation1] ss:$2 sm:$0xff] %v2704_v34  ;;  %v1491_v20 = vld.sshfl [vmem:[#allocation1 + $0x10] sm:$0xff pattern:$0x75316420] }
  0x94   : > { %1512 = vst [vmem:[#allocation1 + $0x10] ss:$2 sm:$0xff] %v2532_v4 }
  0x95   : > { %v327_v8 = vpop.permute.xlu2 %326  ;;  %v252_v9 = vpop.permute.xlu1 %251 }
  0x96   : > { %v258_v10 = vsel %vm257_vm0, %v252_v9, %v2748_v55 }
  0x97   : > { %263 = vst [vmem:[#allocation2 + $0x18] sm:$0xf] %v258_v10 }
  0x9a   : > { %v1514_v11 = vld.sshfl [vmem:[#allocation1 + $0x8] sm:$0xff pattern:$0x75316420]  ;;  %v1513_v12 = vld.sshfl [vmem:[#allocation1] sm:$0xff pattern:$0x75316420] }
  0x9b   : > { %1518 = vrot.lane.b32.xlu0 %v1514_v11, %s2607_s22  ;;  %1516 = vrot.lane.b32.xlu2 %v1513_v12, %s2607_s22  ;;  %1534 = vst [vmem:[#allocation1] ss:$2 sm:$0xff] %v2704_v34  ;;  %v1515_v28 = vld.sshfl [vmem:[#allocation1 + $0x10] sm:$0xff pattern:$0x75316420] }
  0x9c   : > { %1536 = vst [vmem:[#allocation1 + $0x10] ss:$2 sm:$0xff] %v2534_v27 }
  0x9d   : > { %v331_v13 = vpop.permute.xlu2 %330  ;;  %v277_v14 = vpop.permute.xlu1 %276 }
  0x9e   : > { %340 = vst.msk [vmem:[#allocation2 + $0x70] sm:$0xf] %vm239_vm2, %v331_v13  ;;  %v283_v17 = vsel %vm282_vm3, %v277_v14, %v2761_v61 }
  0x9f   : > { %288 = vst [vmem:[#allocation2 + $0x30] sm:$0xf] %v283_v17 }
  0xa2   : > { %v1538_v5 = vld.sshfl [vmem:[#allocation1 + $0x8] sm:$0xff pattern:$0x75316420]  ;;  %v1537_v21 = vld.sshfl [vmem:[#allocation1] sm:$0xff pattern:$0x75316420] }
  0xa3   : > { %1422 = vrot.lane.b32.xlu2 %v2743_v53, %s2603_s18  ;;  %1542 = vrot.lane.b32.xlu1 %v1538_v5, %s2608_s23  ;;  %v1539_v43 = vld.sshfl [vmem:[#allocation1 + $0x10] sm:$0xff pattern:$0x75316420] }
  0xa4   : > { %1540 = vrot.lane.b32.xlu0 %v1537_v21, %s2608_s23 }
  0xa5   : > { %v377_v15 = vpop.permute.xlu2 %376  ;;  %v302_v18 = vpop.permute.xlu1 %301 }
  0xa6   : > { %v306_v16 = vpop.permute.xlu0 %305  ;;  %v308_v19 = vsel %vm307_vm4, %v302_v18, %v304_v2 }
  0xa7   : > { %v309_v3 = vsel %vm307_vm4, %v304_v2, %v306_v16  ;;  %315 = vst.msk [vmem:[#allocation2 + $0x58] sm:$0xf] %vm239_vm2, %v306_v16 }
  0xa8   : > { %314 = vst [vmem:[#allocation2 + $0x50] sm:$0xf] %v309_v3 }
  0xa9   : > { %313 = vst [vmem:[#allocation2 + $0x48] sm:$0xf] %v308_v19  ;;  %v445_v19 = vld [vmem:[#allocation2 + $0x18] sm:$0xff] }
  0xab   : > { %1372 = vrot.lane.b32.xlu2 %v2724_v44, %s2601_s16  ;;  %1420 = vrot.lane.b32.xlu1 %v2741_v52, %s2603_s18  ;;  %v2850_v44 = vadd.s32 72, %v153_v39 }
  0xac   : > { %1396 = vrot.lane.b32.xlu0 %v2733_v48, %s2602_s17 }
  0xad   : > { %v379_v22 = vpop.permute.xlu2 %378  ;;  %vm172_vm8 = vcmp.eq.s32.totalorder %v2850_v44, 72 }
  0xae   : > { %v329_v23 = vpop.permute.xlu0 %328  ;;  %v383_v24 = vsel %vm382_vm6, %v377_v15, %v379_v22  ;;  %v2516_v48 = vsel %vm172_vm8, 1.0, %v2609_v56  ;;  %v448_v15 = vld [vmem:[#allocation2 + $0x30] sm:$0xff] }
  0xaf   : > { %v333_v25 = vsel %vm332_vm5, %v327_v8, %v329_v23  ;;  %v334_v26 = vsel %vm332_vm5, %v329_v23, %v331_v13  ;;  %388 = vst [vmem:[#allocation2 + $0x90] sm:$0xf] %v383_v24  ;;  %v2923_v4 = vand.u32 4294901760, %v448_v15  ;;  %v2932_v24 = vld [vmem:[#allocation2 + $0x8] sm:$0xff] }
  0xb0   : > { %338 = vst [vmem:[#allocation2 + $0x60] sm:$0xf] %v333_v25  ;;  %v451_v11 = vld [vmem:[#allocation2 + $0x48] sm:$0xff]  ;;  %v2935_v25 = vand.u32 4294901760, %v445_v19 }
  0xb1   : > { %339 = vst [vmem:[#allocation2 + $0x68] sm:$0xf] %v334_v26  ;;  %v2918_v18 = vand.u32 4294901760, %v451_v11 }
  0xb2   : > { %222 = vst [vmem:[#allocation2 + $0xe0] sm:$0xff] %v2516_v48  ;;  %v2969_v39 = vsub.f32 %v445_v19, %v2935_v25 }
  0xb3   : > { %1520 = vrot.lane.b32.xlu2 %v1515_v28, %s2607_s22  ;;  %1398 = vrot.lane.b32.xlu1 %v2735_v49, %s2602_s17  ;;  %v4074_v49 = vmov 1.0   ;;  %223 = vst.msk [vmem:[#allocation2 + $0xe8] sm:$0xff] %vm195_vm1, %v2516_v48  ;;  %v2947_v28 = vsub.f32 %v451_v11, %v2918_v18  ;;  %vm1291_vm1 = vcmask 784000  }
  0xb4   : > { %1374 = vrot.lane.b32.xlu0 %v2726_v45, %s2601_s16  ;;  %2584 = vmatpush.msk.msra.mxu0 %vm172_vm8, %v4074_v49  ;;  %1360 = vst [vmem:[#allocation2 + $0x8] sm:$0xf] %v2715_v41  ;;  %v2952_v41 = vsub.f32 %v448_v15, %v2923_v4 }
  0xb5   : > { %v354_v29 = vpop.permute.xlu1 %353  ;;  %v256_v30 = vpop.permute.xlu2 %255  ;;  %2585 = vmatpush.msk.msra.mxu3 %vm172_vm8, %v4074_v49 }
  0xb6   : > { %v352_v31 = vpop.permute.xlu0 %351  ;;  %v259_v32 = vsel %vm257_vm0, %v2748_v55, %v256_v30  ;;  %265 = vst.msk [vmem:[#allocation2 + $0x28] sm:$0xf] %vm239_vm2, %v256_v30 }
  0xb7   : > { %v358_v33 = vsel %vm357_vm7, %v352_v31, %v354_v29  ;;  %264 = vst [vmem:[#allocation2 + $0x20] sm:$0xf] %v259_v32  ;;  %v454_v7 = vld [vmem:[#allocation2 + $0x60] sm:$0xff]  ;;  %v2955_v31 = vand.u32 4294901760, %v2882_v59 }
  0xb8   : > { %363 = vst [vmem:[#allocation2 + $0x78] sm:$0xf] %v358_v33  ;;  %v2908_v14 = vand.u32 4294901760, %v454_v7 }
  0xba   : > { %v2929_v21 = vsub.f32 %v454_v7, %v2908_v14 }
  0xbb   : > { %1448 = vrot.lane.b32.xlu2 %v2756_v60, %s2604_s19  ;;  %1544 = vrot.lane.b32.xlu1 %v1539_v43, %s2608_s23 }
  0xbc   : > { %1496 = vrot.lane.b32.xlu0 %v1491_v20, %s2606_s21 }
  0xbd   : > { %v356_v34 = vpop.permute.xlu1 %355 }
  0xbe   : > { %v359_v35 = vsel %vm357_vm7, %v354_v29, %v356_v34  ;;  %365 = vst.msk [vmem:[#allocation2 + $0x88] sm:$0xf] %vm239_vm2, %v356_v34  ;;  %v381_v36 = vpop.permute.xlu0 %380 }
  0xbf   : > { %364 = vst [vmem:[#allocation2 + $0x80] sm:$0xf] %v359_v35  ;;  %v384_v37 = vsel %vm382_vm6, %v379_v22, %v381_v36  ;;  %v457_v40 = vld [vmem:[#allocation2 + $0x78] sm:$0xff] }
  0xc0   : > { %389 = vst [vmem:[#allocation2 + $0x98] sm:$0xf] %v384_v37 }
  0xc1   : > { %390 = vst.msk [vmem:[#allocation2 + $0xa0] sm:$0xf] %vm239_vm2, %v381_v36  ;;  %v4065_v36 = vand.u32 4294901760, %v2929_v21 }
  0xc3   : > { %1376 = vrot.lane.b32.xlu2 %v2729_v46, %s2601_s16  ;;  %v2866_v46 = vsub.f32 %v2516_v48, %v2516_v48  ;;  %1472 = vrot.lane.b32.xlu1 %v2769_v1, %s2605_s20  ;;  %v460_v1 = vld [vmem:[#allocation2 + $0x90] sm:$0xff]  ;;  %s2622_s16 = smov 98  }
  0xc4   : > { %1424 = vrot.lane.b32.xlu0 %v2745_v54, %s2603_s18  ;;  %v2894_v6 = vand.u32 4294901760, %v460_v1 }
  0xc5   : > { %v402_v45 = vpop.permute.xlu1 %401  ;;  %590 = vmatpush.msra.mxu2 %v2866_v46  ;;  %v2870_v51 = vand.u32 4294901760, %v2866_v46 }
  0xc6   : > { %v406_v47 = vpop.permute.xlu0 %405  ;;  %v2906_v13 = vsub.f32 %v460_v1, %v2894_v6  ;;  %v458_v38 = vld [vmem:[#allocation2 + $0x80] sm:$0xff] }
  0xc7   : > { %415 = vst.msk [vmem:[#allocation2 + $0xb8] sm:$0xf] %vm239_vm2, %v406_v47  ;;  %v520_v57 = vsub.f32 %v2866_v46, %v2870_v51  ;;  %v461_v30 = vld [vmem:[#allocation2 + $0x98] sm:$0xff] }
  0xc8   : > { %v537_v22 = vand.u32 4294901760, %v2906_v13  ;;  %v2971_v43 = vand.u32 4294901760, %v461_v30 }
  0xc9   : > { %v2880_v58 = vand.u32 4294901760, %v520_v57 }
  0xca   : > { %v538_v35 = vsub.f32 %v2906_v13, %v537_v22  ;;  %v3008_v7 = vsub.f32 %v461_v30, %v2971_v43 }
  0xcb   : > { %522 = vmatpush.msra.mxu1 %v2880_v58  ;;  %1400 = vrot.lane.b32.xlu1 %v2738_v50, %s2602_s17 }
  0xcd   : > { %v404_v52 = vpop.permute.xlu1 %403 }
  0xce   : > { %v408_v53 = vsel %vm407_vm9, %v402_v45, %v404_v52  ;;  %v409_v55 = vsel %vm407_vm9, %v404_v52, %v406_v47  ;;  %v427_v56 = vpop.permute.xlu0 %426  ;;  %v455_v45 = vld [vmem:[#allocation2 + $0x68] sm:$0xff]  ;;  %v4064_v52 = vand.u32 4294901760, %v2947_v28 }
  0xcf   : > { %413 = vst [vmem:[#allocation2 + $0xa8] sm:$0xf] %v408_v53 }
  0xd0   : > { %414 = vst [vmem:[#allocation2 + $0xb0] sm:$0xf] %v409_v55  ;;  %v2985_v55 = vsub.f32 %v2882_v59, %v2955_v31  ;;  %v441_v59 = vld [vmem:[%s4057_s1] sm:$0x3f] }
  0xd5   : > { %v281_v54 = vpop.permute.xlu1 %280 }
  0xd6   : > { %v284_v60 = vsel %vm282_vm3, %v2761_v61, %v281_v54  ;;  %290 = vst.msk [vmem:[#allocation2 + $0x40] sm:$0xf] %vm239_vm2, %v281_v54  ;;  %v429_v62 = vpop.permute.xlu0 %428  ;;  %v463_v0 = vld [vmem:[#allocation2 + $0xa8] sm:$0xff]  ;;  %v2899_v61 = vand.u32 4294901760, %v457_v40  ;;  %v2991_v54 = vand.u32 4294901760, %v458_v38 }
  0xd7   : > { %289 = vst [vmem:[#allocation2 + $0x38] sm:$0xf] %v284_v60  ;;  %v433_v63 = vsel %vm432_vm10, %v427_v56, %v429_v62  ;;  %v2892_v2 = vand.u32 4294901760, %v463_v0  ;;  %v464_v23 = vld [vmem:[#allocation2 + $0xb0] sm:$0xff]  ;;  %v4061_v56 = vand.u32 4294901760, %v2952_v41 }
  0xd8   : > { %438 = vst [vmem:[#allocation2 + $0xc0] sm:$0xf] %v433_v63  ;;  %v2916_v17 = vsub.f32 %v457_v40, %v2899_v61  ;;  %v2957_v33 = vand.u32 4294901760, %v464_v23  ;;  %v452_v60 = vld [vmem:[#allocation2 + $0x50] sm:$0xff]  ;;  %v550_v63 = vsub.f32 %v2929_v21, %v4065_v36 }
  0xd9   : > { %v2897_v50 = vsub.f32 %v463_v0, %v2892_v2  ;;  %v2997_v0 = vand.u32 4294901760, %v455_v45  ;;  %v3015_v11 = vand.u32 4294901760, %v452_v60 }
  0xda   : > { %v4067_v29 = vand.u32 4294901760, %v2916_v17  ;;  %v2989_v57 = vsub.f32 %v464_v23, %v2957_v33  ;;  %v4063_v23 = vand.u32 4294901760, %v2985_v55  ;;  %v551_v30 = vand.u32 4294901760, %v550_v63 }
  0xdb   : > { %v531_v3 = vand.u32 4294901760, %v2897_v50 }
  0xdc   : > { %v544_v48 = vsub.f32 %v2916_v17, %v4067_v29  ;;  %v4062_v19 = vand.u32 4294901760, %v2989_v57 }
  0xdd   : > { %v2921_v20 = vpop.permute.xlu2 %1444  ;;  %v532_v27 = vsub.f32 %v2897_v50, %v531_v3 }
  0xde   : > { %v431_v8 = vpop.permute.xlu0 %430  ;;  %v449_v15 = vld [vmem:[#allocation2 + $0x38] sm:$0xff] }
  0xdf   : > { %v434_v9 = vsel %vm432_vm10, %v429_v62, %v431_v8  ;;  %440 = vst.msk [vmem:[#allocation2 + $0xd0] sm:$0xf] %vm239_vm2, %v431_v8  ;;  %v466_v10 = vld [vmem:[#allocation2 + $0xc0] sm:$0xff]  ;;  %v533_v47 = vand.u32 4294901760, %v532_v27  ;;  %v539_v62 = vand.u32 4294901760, %v538_v35  ;;  %v545_v8 = vand.u32 4294901760, %v544_v48 }
  0xe0   : > { %439 = vst [vmem:[#allocation2 + $0xc8] sm:$0xf] %v434_v9  ;;  %v2903_v12 = vand.u32 4294901760, %v466_v10  ;;  %v556_v9 = vsub.f32 %v2947_v28, %v4064_v52  ;;  %v474_v27 = vsel %vm472_vm11, %v441_v59, 0  ;;  %v446_v48 = vld [vmem:[#allocation2 + $0x20] sm:$0xff] }
  0xe1   : > { %v3047_v63 = vand.u32 4294901760, %v474_v27 }
  0xe2   : > { %485 = vmatpush.msra.mxu0 %v2903_v12  ;;  %633 = vmatpush.msra.mxu3 %v2903_v12  ;;  %v2913_v16 = vsub.f32 %v466_v10, %v2903_v12  ;;  %v4060_v10 = vand.u32 4294901760, %v2969_v39  ;;  %v557_v59 = vand.u32 4294901760, %v556_v9 }
  0xe4   : > { %487 = vmatpush.msra.mxu0 %v2892_v2  ;;  %593 = vmatpush.msra.mxu2 %v2913_v16  ;;  %v525_v5 = vand.u32 4294901760, %v2913_v16 }
  0xe5   : > { %635 = vmatpush.msra.mxu3 %v2892_v2 }
  0xe6   : > { %489 = vmatpush.msra.mxu0 %v2894_v6  ;;  %596 = vmatpush.msra.mxu2 %v2897_v50  ;;  %v526_v26 = vsub.f32 %v2913_v16, %v525_v5 }
  0xe7   : > { %637 = vmatpush.msra.mxu3 %v2894_v6  ;;  %v467_v32 = vld [vmem:[#allocation2 + $0xc8] sm:$0xff] }
  0xe8   : > { %491 = vmatpush.msra.mxu0 %v2899_v61  ;;  %599 = vmatpush.msra.mxu2 %v2906_v13  ;;  %v527_v34 = vand.u32 4294901760, %v526_v26  ;;  %v2965_v37 = vand.u32 4294901760, %v467_v32  ;;  %v3022_v26 = vsub.f32 %v458_v38, %v2991_v54  ;;  %v4066_v38 = vand.u32 4294901760, %v3008_v7 }
  0xe9   : > { %639 = vmatpush.msra.mxu3 %v2899_v61 }
  0xea   : > { %493 = vmatpush.msra.mxu0 %v2908_v14  ;;  %528 = vmatpush.msra.mxu1 %v527_v34  ;;  %v2979_v53 = vsub.f32 %v467_v32, %v2965_v37  ;;  %v562_v32 = vsub.f32 %v2952_v41, %v4061_v56  ;;  %v3030_v34 = vsub.f32 %v455_v45, %v2997_v0  ;;  %v3061_v56 = vand.u32 4294901760, %v446_v48 }
  0xeb   : > { %602 = vmatpush.msra.mxu2 %v2916_v17  ;;  %641 = vmatpush.msra.mxu3 %v2908_v14  ;;  %v568_v45 = vsub.f32 %v2969_v39, %v4060_v10 }
  0xec   : > { %495 = vmatpush.msra.mxu0 %v2918_v18  ;;  %534 = vmatpush.msra.mxu1 %v533_v47  ;;  %v4059_v40 = vand.u32 4294901760, %v2979_v53  ;;  %v3038_v47 = vand.u32 4294901760, %v449_v15  ;;  %v812_v10 = vand.u32 4294901760, %v3030_v34 }
  0xed   : > { %605 = vmatpush.msra.mxu2 %v2929_v21  ;;  %643 = vmatpush.msra.mxu3 %v2918_v18  ;;  %v3004_v1 = vpop.permute.xlu2 %1494 }
  0xee   : > { %497 = vmatpush.msra.mxu0 %v2923_v4  ;;  %540 = vmatpush.msra.mxu1 %v539_v62  ;;  %v789_v35 = vsub.f32 %v2979_v53, %v4059_v40  ;;  %v3045_v62 = vsub.f32 %v452_v60, %v3015_v11  ;;  %v806_v40 = vand.u32 4294901760, %v3022_v26  ;;  %v563_v60 = vand.u32 4294901760, %v562_v32 }
  0xef   : > { %608 = vmatpush.msra.mxu2 %v2947_v28  ;;  %645 = vmatpush.msra.mxu3 %v2923_v4  ;;  %v3072_v36 = vsub.f32 %v449_v15, %v3038_v47  ;;  %v3075_v32 = vand.u32 4294901760, %v2932_v24 }
  0xf0   : > { %499 = vmatpush.msra.mxu0 %v2935_v25  ;;  %546 = vmatpush.msra.mxu1 %v545_v8  ;;  %v795_v8 = vsub.f32 %v2989_v57, %v4062_v19  ;;  %v790_v9 = vand.u32 4294901760, %v789_v35  ;;  %v569_v35 = vand.u32 4294901760, %v568_v45  ;;  %v807_v16 = vsub.f32 %v3022_v26, %v806_v40 }
  0xf1   : > { %611 = vmatpush.msra.mxu2 %v2952_v41  ;;  %647 = vmatpush.msra.mxu3 %v2935_v25  ;;  %v813_v45 = vsub.f32 %v3030_v34, %v812_v10 }
  0xf2   : > { %501 = vmatpush.msra.mxu0 %v2955_v31  ;;  %552 = vmatpush.msra.mxu1 %v551_v30  ;;  %v574_v30 = vsub.f32 %v2985_v55, %v4063_v23  ;;  %v801_v23 = vsub.f32 %v3008_v7, %v4066_v38  ;;  %v3086_v38 = vsub.f32 %v474_v27, %v3047_v63  ;;  %v796_v15 = vand.u32 4294901760, %v795_v8 }
  0xf3   : > { %614 = vmatpush.msra.mxu2 %v2969_v39  ;;  %649 = vmatpush.msra.mxu3 %v2955_v31  ;;  %v824_v8 = vand.u32 4294901760, %v3072_v36 }
  0xf4   : > { %666 = vmatpush.msrb.mxu0 %v2870_v51  ;;  %558 = vmatpush.msra.mxu1 %v557_v59  ;;  %v575_v29 = vand.u32 4294901760, %v574_v30  ;;  %v802_v27 = vand.u32 4294901760, %v801_v23  ;;  %v3104_v30 = vsub.f32 %v2932_v24, %v3075_v32  ;;  %v3110_v50 = vand.u32 4294901760, %v3086_v38 }
  0xf5   : > { %785 = vmatpush.msrb.mxu3 %v2880_v58  ;;  %617 = vmatpush.msra.mxu2 %v2985_v55  ;;  %v3064_v19 = vpop.permute.xlu2 %1516  ;;  %v3069_v52 = vpop.permute.xlu0 %1446 }
  0xf6   : > { %670 = vmatpush.msrb.mxu0 %v525_v5  ;;  %v1450_v59 = vsel %vm332_vm5, %v2921_v20, %v3069_v52  ;;  %564 = vmatpush.msra.mxu1 %v563_v60  ;;  %v818_v5 = vand.u32 4294901760, %v3045_v62  ;;  %v3096_v20 = vsub.f32 %v446_v48, %v3061_v56  ;;  %v4088_v48 = vand.u32 4294901760, %v2916_v17 }
  0xf7   : > { %2586 = vmatpush.msk.msrb.mxu2 %vm172_vm8, %v4074_v49  ;;  %791 = vmatpush.msrb.mxu3 %v790_v9  ;;  %1455 = vst [vmem:[#allocation2 + $0x60] sm:$0xf] %v1450_v59  ;;  %v836_v60 = vand.u32 4294901760, %v3104_v30  ;;  %v4089_v9 = vand.u32 4294901760, %v2929_v21 }
  0xf8   : > { %674 = vmatpush.msrb.mxu0 %v531_v3  ;;  %570 = vmatpush.msra.mxu1 %v569_v35  ;;  %v808_v3 = vand.u32 4294901760, %v807_v16  ;;  %v819_v23 = vsub.f32 %v3045_v62, %v818_v5  ;;  %v830_v13 = vand.u32 4294901760, %v3096_v20  ;;  %v505_v35 = vsub.f32 %v3086_v38, %v3110_v50 }
  0xf9   : > { %748 = vmatpush.msrb.mxu2 %v2965_v37  ;;  %797 = vmatpush.msrb.mxu3 %v796_v15 }
  0xfa   : > { %678 = vmatpush.msrb.mxu0 %v537_v22  ;;  %576 = vmatpush.msra.mxu1 %v575_v29  ;;  %v814_v22 = vand.u32 4294901760, %v813_v45  ;;  %v825_v29 = vsub.f32 %v3072_v36, %v824_v8  ;;  %v820_v15 = vand.u32 4294901760, %v819_v23  ;;  %v837_v45 = vsub.f32 %v3104_v30, %v836_v60 }
  0xfb   : > { %750 = vmatpush.msrb.mxu2 %v2957_v33  ;;  %803 = vmatpush.msrb.mxu3 %v802_v27  ;;  %v4090_v27 = vand.u32 4294901760, %v2947_v28  ;;  %v3151_v28 = vand.u32 4294901760, %v505_v35 }
  0xfc   : > { %682 = vmatpush.msrb.mxu0 %v4088_v48  ;;  %2587 = vmatpush.msk.msrb.mxu1 %vm172_vm8, %v4074_v49  ;;  %v826_v21 = vand.u32 4294901760, %v825_v29  ;;  %v838_v48 = vand.u32 4294901760, %v837_v45  ;;  %v4094_v29 = vand.u32 4294901760, %v2979_v53 }
  0xfd   : > { %752 = vmatpush.msrb.mxu2 %v2971_v43  ;;  %809 = vmatpush.msrb.mxu3 %v808_v3  ;;  %v3122_v24 = vpop.permute.xlu2 %1422  ;;  %v3128_v17 = vpop.permute.xlu1 %1470  ;;  %v4091_v3 = vand.u32 4294901760, %v2952_v41 }
  0xfe   : > { %686 = vmatpush.msrb.mxu0 %v4089_v9  ;;  %717 = vmatpush.msrb.mxu1 %v2903_v12  ;;  %v1469_v59 = vpop.permute.xlu0 %1468  ;;  %v831_v12 = vsub.f32 %v3096_v20, %v830_v13 }
  0xff   : > { %754 = vmatpush.msrb.mxu2 %v2991_v54  ;;  %815 = vmatpush.msrb.mxu3 %v814_v22  ;;  %v1474_v16 = vsel %vm357_vm7, %v1469_v59, %v3128_v17 }
 0x100   : > { %690 = vmatpush.msrb.mxu0 %v4090_v27  ;;  %719 = vmatpush.msrb.mxu1 %v2892_v2  ;;  %1479 = vst [vmem:[#allocation2 + $0x78] sm:$0xf] %v1474_v16  ;;  %v4092_v2 = vand.u32 4294901760, %v2969_v39  ;;  %v832_v23 = vand.u32 4294901760, %v831_v12  ;;  %v4093_v39 = vand.u32 4294901760, %v2985_v55  ;;  %v450_v27 = vld [vmem:[#allocation2 + $0x40] sm:$0xff] }
 0x101   : > { %756 = vmatpush.msrb.mxu2 %v2997_v0  ;;  %821 = vmatpush.msrb.mxu3 %v820_v15 }
 0x102   : > { %694 = vmatpush.msrb.mxu0 %v4091_v3  ;;  %721 = vmatpush.msrb.mxu1 %v2894_v6 }
 0x103   : > { %758 = vmatpush.msrb.mxu2 %v3015_v11  ;;  %827 = vmatpush.msrb.mxu3 %v826_v21 }
 0x104   : > { %620 = vmatmul.f32.vlgmr.msra.gmra.mxu2 %v3086_v38  ;;  %698 = vmatpush.msrb.mxu0 %v4092_v2 }
 0x105   : > { %723 = vmatpush.msrb.mxu1 %v2899_v61  ;;  %760 = vmatpush.msrb.mxu2 %v3038_v47  ;;  %v3159_v41 = vpop.permute.xlu2 %1372  ;;  %v1493_v22 = vpop.permute.xlu1 %1492 }
 0x106   : > { %833 = vmatpush.msrb.mxu3 %v832_v23  ;;  %507 = vmatmul.f32.vlgmr.msra.gmra.mxu0 %v3151_v28  ;;  %v1498_v6 = vsel %vm382_vm6, %v1493_v22, %v3004_v1  ;;  %v3320_v23 = vand.u32 4294901760, %v450_v27 }
 0x107   : > { %653 = vmatmul.f32.vlgmr.msra.gmra.mxu3 %v3110_v50  ;;  %702 = vmatpush.msrb.mxu0 %v4093_v39  ;;  %1503 = vst [vmem:[#allocation2 + $0x90] sm:$0xf] %v1498_v6 }
 0x108   : > { %725 = vmatpush.msrb.mxu1 %v2908_v14  ;;  %762 = vmatpush.msrb.mxu2 %v3061_v56  ;;  %v3180_v14 = vld [vmem:[#allocation2 + $0xb8] sm:$0xff] }
 0x109   : > { %839 = vmatpush.msrb.mxu3 %v838_v48  ;;  %578 = vmatmul.f32.vlgmr.msra.gmra.mxu1 %v3047_v63 }
 0x10a   : > { %853 = vmatpush.msra.mxu0 %v2866_v46  ;;  %727 = vmatpush.msrb.mxu1 %v2918_v18 }
 0x10b   : > { %2588 = vmatpush.msk.msra.mxu3 %vm172_vm8, %v4074_v49  ;;  %764 = vmatpush.msrb.mxu2 %v3075_v32 }
 0x10c   : > { %856 = vmatpush.msra.mxu0 %v2979_v53  ;;  %729 = vmatpush.msrb.mxu1 %v2923_v4  ;;  %v4095_v4 = vand.u32 4294901760, %v2989_v57  ;;  %v4096_v53 = vand.u32 4294901760, %v3008_v7 }
 0x10d   : > { %929 = vmatpush.msra.mxu2 %v2870_v51  ;;  %980 = vmatpush.msra.mxu3 %v2965_v37  ;;  %v1519_v61 = vpop.permute.xlu0 %1518  ;;  %v1521_v55 = vpop.permute.xlu2 %1520 }
 0x10e   : > { %859 = vmatpush.msra.mxu0 %v2989_v57  ;;  %v1522_v18 = vsel %vm407_vm9, %v3064_v19, %v1519_v61  ;;  %v1523_v9 = vsel %vm407_vm9, %v1519_v61, %v1521_v55  ;;  %1529 = vst.msk [vmem:[#allocation2 + $0xb8] sm:$0xf] %vm239_vm2, %v1521_v55  ;;  %731 = vmatpush.msrb.mxu1 %v2935_v25  ;;  %v3199_v19 = vld [vmem:[#allocation2 + $0x10] sm:$0xff]  ;;  %v471_v25 = vld [vmem:[#allocation2 + $0xe8] sm:$0xff] }
 0x10f   : > { %933 = vmatpush.msra.mxu2 %v4094_v29  ;;  %982 = vmatpush.msra.mxu3 %v2957_v33  ;;  %1527 = vst [vmem:[#allocation2 + $0xa8] sm:$0xf] %v1522_v18  ;;  %v3329_v61 = vand.u32 4294901760, %v3199_v19 }
 0x110   : > { %704 = vmatmul.f32.vlgmr.msrb.gmra.mxu0 %v3047_v63  ;;  %1528 = vst [vmem:[#allocation2 + $0xb0] sm:$0xf] %v1523_v9  ;;  %733 = vmatpush.msrb.mxu1 %v2955_v31  ;;  %v3212_v31 = vld [vmem:[#allocation2 + $0x70] sm:$0xff] }
 0x111   : > { %937 = vmatpush.msra.mxu2 %v4095_v4  ;;  %862 = vmatpush.msra.mxu0 %v3008_v7  ;;  %1361 = vst.msk [vmem:[#allocation2 + $0x10] sm:$0xf] %vm239_vm2, %v2720_v42  ;;  %v3222_v7 = vand.u32 4294901760, %v471_v25  ;;  %v3283_v59 = vand.u32 4294901760, %v3212_v31  ;;  %v1570_v4 = vld [vmem:[#allocation2 + $0x78] sm:$0xff] }
 0x112   : > { %984 = vmatpush.msra.mxu3 %v2971_v43  ;;  %735 = vmatmul.f32.vlgmr.msrb.gmra.mxu1 %v3047_v63 }
 0x113   : > { %941 = vmatpush.msra.mxu2 %v4096_v53  ;;  %865 = vmatpush.msra.mxu0 %v3022_v26  ;;  %v3246_v26 = vld [vmem:[#allocation2 + $0x28] sm:$0xff] }
 0x114   : > { %2589 = vmatpush.msk.msra.mxu1 %vm172_vm8, %v4074_v49  ;;  %986 = vmatpush.msra.mxu3 %v2991_v54  ;;  %v3326_v39 = vand.u32 4294901760, %v3246_v26 }
 0x115   : > { %868 = vmatpush.msra.mxu0 %v3030_v34  ;;  %945 = vmatpush.msra.mxu2 %v806_v40  ;;  %v1449_v57 = vpop.permute.xlu2 %1448  ;;  %v459_v40 = vld [vmem:[#allocation2 + $0x88] sm:$0xff] }
 0x116   : > { %896 = vmatpush.msra.mxu1 %v2965_v37  ;;  %988 = vmatpush.msra.mxu3 %v2997_v0  ;;  %v1451_v42 = vsel %vm332_vm5, %v3069_v52, %v1449_v57  ;;  %1457 = vst.msk [vmem:[#allocation2 + $0x70] sm:$0xf] %vm239_vm2, %v1449_v57  ;;  %v468_v37 = vld [vmem:[#allocation2 + $0xd0] sm:$0xff]  ;;  %v1541_v35 = vpop.permute.xlu0 %1540  ;;  %v1576_v3 = vld [vmem:[#allocation2 + $0xa8] sm:$0xff]  ;;  %vm1337_vm5 = vcmask 818176  }
 0x117   : > { %871 = vmatpush.msra.mxu0 %v3045_v62  ;;  %949 = vmatpush.msra.mxu2 %v812_v10  ;;  %1456 = vst [vmem:[#allocation2 + $0x68] sm:$0xf] %v1451_v42  ;;  %v3233_v52 = vand.u32 4294901760, %v468_v37  ;;  %v462_v10 = vld [vmem:[#allocation2 + $0xa0] sm:$0xff]  ;;  %v3338_v9 = vand.u32 4294901760, %v1576_v3 }
 0x118   : > { %898 = vmatpush.msra.mxu1 %v2957_v33  ;;  %990 = vmatpush.msra.mxu3 %v3015_v11  ;;  %v3236_v33 = vsub.f32 %v471_v25, %v3222_v7  ;;  %v3262_v62 = vand.u32 4294901760, %v462_v10 }
 0x119   : > { %874 = vmatpush.msra.mxu0 %v3072_v36  ;;  %953 = vmatpush.msra.mxu2 %v818_v5  ;;  %v3260_v36 = vsub.f32 %v468_v37, %v3233_v52  ;;  %v3355_v37 = vsub.f32 %v450_v27, %v3320_v23 }
 0x11a   : > { %900 = vmatpush.msra.mxu1 %v2971_v43  ;;  %992 = vmatpush.msra.mxu3 %v3038_v47  ;;  %v3244_v43 = vand.u32 4294901760, %v3180_v14  ;;  %v3265_v5 = vand.u32 4294901760, %v3236_v33 }
 0x11b   : > { %770 = vmatmul.f32.vlgmr.msrb.gmra.mxu2 %v3151_v28  ;;  %877 = vmatpush.msra.mxu0 %v3096_v20 }
 0x11c   : > { %902 = vmatpush.msra.mxu1 %v2991_v54  ;;  %957 = vmatpush.msra.mxu2 %v824_v8  ;;  %v3252_v54 = vand.u32 4294901760, %v459_v40  ;;  %4097 = vst [vmem:[#allocation3_spill] sm:$0xff] %v3265_v5  ;;  %v453_v8 = vld [vmem:[#allocation2 + $0x58] sm:$0xff] }
 0x11d   : > { %994 = vmatpush.msra.mxu3 %v3061_v56  ;;  %880 = vmatpush.msra.mxu0 %v3104_v30  ;;  %v3248_v34 = vpop.permute.xlu2 %1376  ;;  %v3288_v16 = vand.u32 4294901760, %v453_v8  ;;  %v3295_v30 = vsub.f32 %v462_v10, %v3262_v62  ;;  %v3363_v10 = vsub.f32 %v3246_v26, %v3326_v39 }
 0x11e   : > { %841 = vmatmul.f32.vlgmr.msrb.gmra.mxu3 %v3047_v63  ;;  %904 = vmatpush.msra.mxu1 %v2997_v0  ;;  %1385 = vst.msk [vmem:[#allocation2 + $0x28] sm:$0xf] %vm239_vm2, %v3248_v34  ;;  %v3267_v0 = vpop.permute.xlu1 %1542  ;;  %v3286_v15 = vsub.f32 %v459_v40, %v3252_v54  ;;  %v1397_v6 = vpop.permute.xlu0 %1396 }
 0x11f   : > { %961 = vmatpush.msra.mxu2 %v830_v13  ;;  %996 = vmatpush.msra.mxu3 %v3075_v32  ;;  %v1546_v20 = vsel %vm432_vm10, %v1541_v35, %v3267_v0  ;;  %v3278_v13 = vsub.f32 %v3180_v14, %v3244_v43  ;;  %v3310_v21 = vsub.f32 %v453_v8, %v3288_v16  ;;  %v4071_v48 = vand.u32 4294901760, %v3295_v30  ;;  %v1573_v14 = vld [vmem:[#allocation2 + $0x90] sm:$0xff] }
 0x120   : > { %1009 = vmatpush.msrb.mxu0 %v3222_v7  ;;  %906 = vmatpush.msra.mxu1 %v3015_v11  ;;  %1551 = vst [vmem:[#allocation2 + $0xc0] sm:$0xf] %v1546_v20  ;;  %v1046_v11 = vsub.f32 %v3236_v33, %v3265_v5  ;;  %v4070_v45 = vand.u32 4294901760, %v3286_v15  ;;  %v3357_v40 = vand.u32 4294901760, %v1573_v14  ;;  %v3367_v8 = vsub.f32 %v3199_v19, %v3329_v61 }
 0x121   : > { %1157 = vmatpush.msrb.mxu3 %v3222_v7  ;;  %965 = vmatpush.msra.mxu2 %v836_v60  ;;  %v1051_v60 = vand.u32 4294901760, %v3260_v36  ;;  %v4072_v12 = vand.u32 4294901760, %v3278_v13  ;;  %v4069_v25 = vand.u32 4294901760, %v3310_v21  ;;  %v1064_v42 = vsub.f32 %v3295_v30, %v4071_v48 }
 0x122   : > { %1011 = vmatpush.msrb.mxu0 %v3233_v52  ;;  %908 = vmatpush.msra.mxu1 %v3038_v47  ;;  %v3307_v47 = vsub.f32 %v3212_v31, %v3283_v59  ;;  %v3315_v2 = vand.u32 4294901760, %v1046_v11  ;;  %v1070_v53 = vsub.f32 %v3286_v15, %v4070_v45  ;;  %v3372_v20 = vand.u32 4294901760, %v1570_v4  ;;  %v1567_v11 = vld [vmem:[#allocation2 + $0x60] sm:$0xff] }
 0x123   : > { %1116 = vmatpush.msrb.mxu2 %v3236_v33  ;;  %1159 = vmatpush.msrb.mxu3 %v3233_v52  ;;  %v1058_v29 = vsub.f32 %v3278_v13, %v4072_v12 }
 0x124   : > { %967 = vmatmul.f32.vlgmr.msra.gmra.mxu2 %v3047_v63  ;;  %1013 = vmatpush.msrb.mxu0 %v3244_v43  ;;  %v1071_v26 = vand.u32 4294901760, %v1070_v53  ;;  %v3392_v53 = vand.u32 4294901760, %v1567_v11 }
 0x125   : > { %1119 = vmatpush.msrb.mxu2 %v3260_v36  ;;  %1161 = vmatpush.msrb.mxu3 %v3244_v43  ;;  %v1059_v27 = vand.u32 4294901760, %v1058_v29  ;;  %v4076_v29 = vand.u32 4294901760, %v3355_v37 }
 0x126   : > { %910 = vmatpush.msra.mxu1 %v3061_v56  ;;  %883 = vmatmul.f32.vlgmr.msra.gmra.mxu0 %v3086_v38  ;;  %v1052_v56 = vsub.f32 %v3260_v36, %v1051_v60  ;;  %v1421_v22 = vpop.permute.xlu1 %1420 }
 0x127   : > { %998 = vmatmul.f32.vlgmr.msra.gmra.mxu3 %v3047_v63  ;;  %1015 = vmatpush.msrb.mxu0 %v3262_v62  ;;  %v1426_v55 = vsel %vm307_vm4, %v1421_v22, %v3122_v24  ;;  %v1579_v18 = vld [vmem:[#allocation2 + $0xc0] sm:$0xff]  ;;  %v1082_v22 = vsub.f32 %v3310_v21, %v4069_v25  ;;  %v4079_v25 = vand.u32 4294901760, %v3367_v8 }
 0x128   : > { %1122 = vmatpush.msrb.mxu2 %v3278_v13  ;;  %1163 = vmatpush.msrb.mxu3 %v3262_v62  ;;  %1431 = vst [vmem:[#allocation2 + $0x48] sm:$0xf] %v1426_v55  ;;  %v3347_v31 = vand.u32 4294901760, %v1579_v18  ;;  %v1053_v57 = vand.u32 4294901760, %v1052_v56  ;;  %v3376_v56 = vsub.f32 %v1576_v3, %v3338_v9  ;;  %v1065_v3 = vand.u32 4294901760, %v1064_v42 }
 0x129   : > { %912 = vmatpush.msra.mxu1 %v3075_v32  ;;  %1017 = vmatpush.msrb.mxu0 %v3252_v54  ;;  %v4068_v32 = vand.u32 4294901760, %v3307_v47  ;;  %v4078_v42 = vand.u32 4294901760, %v3363_v10 }
 0x12a   : > { %916 = vmatmul.f32.vlgmr.msra.gmra.mxu1 %v3110_v50  ;;  %1125 = vmatpush.msrb.mxu2 %v3295_v30  ;;  %v3370_v35 = vsub.f32 %v1579_v18, %v3347_v31  ;;  %v3390_v18 = vsub.f32 %v1573_v14, %v3357_v40  ;;  %v3404_v14 = vsub.f32 %v1570_v4, %v3372_v20 }
 0x12b   : > { %1048 = vmatpush.msrb.mxu1 %v3315_v2  ;;  %1165 = vmatpush.msrb.mxu3 %v3252_v54  ;;  %v1076_v19 = vsub.f32 %v3307_v47, %v4068_v32  ;;  %v1375_v32 = vpop.permute.xlu0 %1374 }
 0x12c   : > { %1019 = vmatpush.msrb.mxu0 %v3283_v59  ;;  %1128 = vmatpush.msrb.mxu2 %v3286_v15  ;;  %v4073_v55 = vand.u32 4294901760, %v3370_v35  ;;  %v1378_v48 = vsel %vm257_vm0, %v3159_v41, %v1375_v32  ;;  %v1379_v12 = vsel %vm257_vm0, %v1375_v32, %v3248_v34  ;;  %v4080_v34 = vand.u32 4294901760, %v3390_v18 }
 0x12d   : > { %1054 = vmatpush.msrb.mxu1 %v1053_v57  ;;  %1167 = vmatpush.msrb.mxu3 %v3283_v59  ;;  %1383 = vst [vmem:[#allocation2 + $0x18] sm:$0xf] %v1378_v48  ;;  %v1077_v41 = vand.u32 4294901760, %v1076_v19  ;;  %v3424_v32 = vsub.f32 %v1567_v11, %v3392_v53  ;;  %v4082_v48 = vand.u32 4294901760, %v3404_v14  ;;  %v1555_v19 = vld [vmem:[#allocation2] sm:$0xff]  ;;  %v1083_v11 = vand.u32 4294901760, %v1082_v22 }
 0x12e   : > { %1021 = vmatpush.msrb.mxu0 %v3288_v16  ;;  %1131 = vmatpush.msrb.mxu2 %v3307_v47  ;;  %v3394_v57 = vpop.permute.xlu1 %1398  ;;  %1384 = vst [vmem:[#allocation2 + $0x20] sm:$0xf] %v1379_v12  ;;  %v1100_v12 = vsub.f32 %v3367_v8, %v4079_v25  ;;  %v1650_v22 = vsub.f32 %v3390_v18, %v4080_v34  ;;  %v4098_v25 = vmov 1.0   ;;  %vm1286_vm0 = vcmask 652800  }
 0x12f   : > { %1060 = vmatpush.msrb.mxu1 %v1059_v27  ;;  %1169 = vmatpush.msrb.mxu3 %v3288_v16  ;;  %v1638_v27 = vsub.f32 %v3370_v35, %v4073_v55  ;;  %v1402_v45 = vsel %vm282_vm3, %v1397_v6, %v3394_v57  ;;  %v4077_v55 = vand.u32 4294901760, %v3376_v56  ;;  %v1564_v49 = vld [vmem:[#allocation2 + $0x48] sm:$0xff]  ;;  %v1088_v6 = vsub.f32 %v3355_v37, %v4076_v29 }
 0x130   : > { %1023 = vmatpush.msrb.mxu0 %v3320_v23  ;;  %1134 = vmatpush.msrb.mxu2 %v3310_v21  ;;  %1407 = vst [vmem:[#allocation2 + $0x30] sm:$0xf] %v1402_v45  ;;  %v3416_v4 = vand.u32 4294901760, %v1564_v49  ;;  %v1094_v45 = vsub.f32 %v3363_v10, %v4078_v42 }
 0x131   : > { %1066 = vmatpush.msrb.mxu1 %v1065_v3  ;;  %1171 = vmatpush.msrb.mxu3 %v3320_v23  ;;  %v1639_v3 = vand.u32 4294901760, %v1638_v27  ;;  %v1644_v29 = vsub.f32 %v3376_v56, %v4077_v55  ;;  %v1101_v27 = vand.u32 4294901760, %v1100_v12 }
 0x132   : > { %1025 = vmatpush.msrb.mxu0 %v3326_v39  ;;  %1137 = vmatpush.msrb.mxu2 %v3355_v37 }
 0x133   : > { %1072 = vmatpush.msrb.mxu1 %v1071_v26  ;;  %1173 = vmatpush.msrb.mxu3 %v3326_v39  ;;  %v3433_v26 = vsub.f32 %v1564_v49, %v3416_v4  ;;  %v1089_v49 = vand.u32 4294901760, %v1088_v6  ;;  %v1497_v42 = vpop.permute.xlu0 %1496  ;;  %v1656_v6 = vsub.f32 %v3404_v14, %v4082_v48 }
 0x134   : > { %1027 = vmatpush.msrb.mxu0 %v3329_v61  ;;  %1140 = vmatpush.msrb.mxu2 %v3363_v10  ;;  %v1499_v36 = vsel %vm382_vm6, %v3004_v1, %v1497_v42  ;;  %v4100_v1 = vand.u32 4294901760, %v3424_v32  ;;  %1505 = vst.msk [vmem:[#allocation2 + $0xa0] sm:$0xf] %vm239_vm2, %v1497_v42  ;;  %v4103_v42 = vand.u32 4294901760, %v3286_v15 }
 0x135   : > { %1078 = vmatpush.msrb.mxu1 %v1077_v41  ;;  %1175 = vmatpush.msrb.mxu3 %v3329_v61  ;;  %v3449_v41 = vand.u32 4294901760, %v1555_v19  ;;  %1504 = vst [vmem:[#allocation2 + $0x98] sm:$0xf] %v1499_v36 }
 0x136   : > { %1192 = vmatpush.msra.mxu0 %v3265_v5  ;;  %1143 = vmatpush.msrb.mxu2 %v3367_v8  ;;  %v1545_v55 = vpop.permute.xlu1 %1544 }
 0x137   : > { %1634 = vmatpush.msra.mxu3 %v2880_v58  ;;  %1084 = vmatpush.msrb.mxu1 %v1083_v11  ;;  %v1095_v58 = vand.u32 4294901760, %v1094_v45  ;;  %v1547_v34 = vsel %vm432_vm10, %v3267_v0, %v1545_v55  ;;  %1553 = vst.msk [vmem:[#allocation2 + $0xd0] sm:$0xf] %vm239_vm2, %v1545_v55  ;;  %v1561_v5 = vld [vmem:[#allocation2 + $0x30] sm:$0xff]  ;;  %v4099_v45 = vand.u32 4294901760, %v3278_v13  ;;  %v1558_v11 = vld [vmem:[#allocation2 + $0x18] sm:$0xff]  ;;  %v1662_v55 = vsub.f32 %v3424_v32, %v4100_v1 }
 0x138   : > { %1196 = vmatpush.msra.mxu0 %v1051_v60  ;;  %2590 = vmatpush.msk.msra.mxu2 %vm172_vm8, %v4098_v25  ;;  %v1645_v60 = vand.u32 4294901760, %v1644_v29  ;;  %1552 = vst [vmem:[#allocation2 + $0xc8] sm:$0xf] %v1547_v34  ;;  %v3468_v48 = vand.u32 4294901760, %v1561_v5  ;;  %v1651_v0 = vand.u32 4294901760, %v1650_v22  ;;  %v3473_v29 = vand.u32 4294901760, %v1558_v11 }
 0x139   : > { %1640 = vmatpush.msra.mxu3 %v1639_v3  ;;  %1090 = vmatpush.msrb.mxu1 %v1089_v49  ;;  %v3476_v34 = vsub.f32 %v1555_v19, %v3449_v41  ;;  %v4101_v13 = vand.u32 4294901760, %v3295_v30  ;;  %v4102_v3 = vand.u32 4294901760, %v3433_v26  ;;  %v1657_v22 = vand.u32 4294901760, %v1656_v6 }
 0x13a   : > { %1200 = vmatpush.msra.mxu0 %v4099_v45  ;;  %1597 = vmatpush.msra.mxu2 %v3347_v31  ;;  %v3486_v49 = vsub.f32 %v1561_v5, %v3468_v48  ;;  %v3489_v19 = vsub.f32 %v1558_v11, %v3473_v29  ;;  %v4104_v11 = vand.u32 4294901760, %v3307_v47  ;;  %v4105_v47 = vand.u32 4294901760, %v3310_v21 }
 0x13b   : > { %1646 = vmatpush.msra.mxu3 %v1645_v60  ;;  %1096 = vmatpush.msrb.mxu1 %v1095_v58  ;;  %v1668_v12 = vsub.f32 %v3433_v26, %v4102_v3  ;;  %v1663_v58 = vand.u32 4294901760, %v1662_v55  ;;  %v1685_v36 = vand.u32 4294901760, %v3476_v34  ;;  %v1425_v6 = vpop.permute.xlu0 %1424  ;;  %v4106_v21 = vand.u32 4294901760, %v3355_v37 }
 0x13c   : > { %1204 = vmatpush.msra.mxu0 %v4101_v13  ;;  %1599 = vmatpush.msra.mxu2 %v3338_v9  ;;  %v1673_v30 = vand.u32 4294901760, %v3486_v49  ;;  %v1679_v5 = vand.u32 4294901760, %v3489_v19  ;;  %1433 = vst.msk [vmem:[#allocation2 + $0x58] sm:$0xf] %vm239_vm2, %v1425_v6  ;;  %v4107_v13 = vand.u32 4294901760, %v3363_v10 }
 0x13d   : > { %1652 = vmatpush.msra.mxu3 %v1651_v0  ;;  %1102 = vmatpush.msrb.mxu1 %v1101_v27  ;;  %v1669_v15 = vand.u32 4294901760, %v1668_v12  ;;  %v1427_v0 = vsel %vm307_vm4, %v3122_v24, %v1425_v6  ;;  %v1686_v24 = vsub.f32 %v3476_v34, %v1685_v36  ;;  %vm1306_vm4 = vcmask 1046400  }
 0x13e   : > { %1208 = vmatpush.msra.mxu0 %v4103_v42  ;;  %1601 = vmatpush.msra.mxu2 %v3357_v40  ;;  %v1473_v27 = vpop.permute.xlu1 %1472  ;;  %v1674_v60 = vsub.f32 %v3486_v49, %v1673_v30  ;;  %1432 = vst [vmem:[#allocation2 + $0x50] sm:$0xf] %v1427_v0 }
 0x13f   : > { %1241 = vmatpush.msra.mxu1 %v3222_v7  ;;  %1658 = vmatpush.msra.mxu3 %v1657_v22  ;;  %v1475_v45 = vsel %vm357_vm7, %v3128_v17, %v1473_v27  ;;  %1481 = vst.msk [vmem:[#allocation2 + $0x88] sm:$0xf] %vm239_vm2, %v1473_v27  ;;  %v1554_v17 = vld [vmem:[%s4057_s1] sm:$0x3f]  ;;  %v1687_v3 = vand.u32 4294901760, %v1686_v24  ;;  %v1581_v22 = vld [vmem:[#allocation2 + $0xd0] sm:$0xff] }
 0x140   : > { %1212 = vmatpush.msra.mxu0 %v4104_v11  ;;  %1603 = vmatpush.msra.mxu2 %v3372_v20  ;;  %1480 = vst [vmem:[#allocation2 + $0x80] sm:$0xf] %v1475_v45  ;;  %v1675_v1 = vand.u32 4294901760, %v1674_v60  ;;  %v1586_v55 = vsel %vm472_vm11, %v1554_v17, 0  ;;  %v1556_v27 = vld [vmem:[#allocation2 + $0x8] sm:$0xff]  ;;  %v3665_v6 = vand.u32 4294901760, %v1581_v22 }
 0x141   : > { %1243 = vmatpush.msra.mxu1 %v3233_v52  ;;  %1664 = vmatpush.msra.mxu3 %v1663_v58  ;;  %v1680_v52 = vsub.f32 %v3489_v19, %v1679_v5  ;;  %v3535_v37 = vand.u32 4294901760, %v1586_v55  ;;  %v1559_v58 = vld [vmem:[#allocation2 + $0x20] sm:$0xff]  ;;  %v3690_v24 = vand.u32 4294901760, %v1556_v27 }
 0x142   : > { %1216 = vmatpush.msra.mxu0 %v4105_v47  ;;  %1605 = vmatpush.msra.mxu2 %v3392_v53  ;;  %v1575_v45 = vld [vmem:[#allocation2 + $0xa0] sm:$0xff]  ;;  %v3677_v0 = vand.u32 4294901760, %v1559_v58 }
 0x143   : > { %1245 = vmatpush.msra.mxu1 %v3244_v43  ;;  %1670 = vmatpush.msra.mxu3 %v1669_v15  ;;  %v1681_v43 = vand.u32 4294901760, %v1680_v52 }
 0x144   : > { %1220 = vmatpush.msra.mxu0 %v4106_v21  ;;  %1607 = vmatpush.msra.mxu2 %v3416_v4 }
 0x145   : > { %1247 = vmatpush.msra.mxu1 %v3262_v62  ;;  %1676 = vmatpush.msra.mxu3 %v1675_v1 }
 0x146   : > { %1146 = vmatmul.f32.vlgmr.msrb.gmra.mxu2 %v3086_v38  ;;  %1224 = vmatpush.msra.mxu0 %v4107_v13  ;;  %v1401_v62 = vpop.permute.xlu1 %1400  ;;  %v4108_v38 = vand.u32 4294901760, %v3367_v8  ;;  %v1574_v8 = vld [vmem:[#allocation2 + $0x98] sm:$0xff]  ;;  %v1572_v21 = vld [vmem:[#allocation2 + $0x88] sm:$0xff] }
 0x147   : > { %1249 = vmatpush.msra.mxu1 %v3252_v54  ;;  %1609 = vmatpush.msra.mxu2 %v3468_v48  ;;  %v1403_v12 = vsel %vm282_vm3, %v3394_v57, %v1401_v62  ;;  %1409 = vst.msk [vmem:[#allocation2 + $0x40] sm:$0xf] %vm239_vm2, %v1401_v62  ;;  %v4111_v54 = vand.u32 4294901760, %v3390_v18  ;;  %v1568_v57 = vld [vmem:[#allocation2 + $0x68] sm:$0xff]  ;;  %vm1296_vm2 = vcmask 915200   ;;  %vm1303_vm3 = vcmask 932864  }
 0x148   : > { %1682 = vmatpush.msra.mxu3 %v1681_v43  ;;  %1033 = vmatmul.f32.vlgmr.msrb.gmra.mxu0 %v3151_v28  ;;  %1408 = vst [vmem:[#allocation2 + $0x38] sm:$0xf] %v1403_v12  ;;  %v3697_v43 = vand.u32 4294901760, %v1575_v45  ;;  %v3710_v12 = vsub.f32 %v1559_v58, %v3677_v0 }
 0x149   : > { %1179 = vmatmul.f32.vlgmr.msrb.gmra.mxu3 %v3110_v50  ;;  %1228 = vmatpush.msra.mxu0 %v4108_v38  ;;  %v3551_v50 = vsub.f32 %v1586_v55, %v3535_v37 }
 0x14a   : > { %1251 = vmatpush.msra.mxu1 %v3283_v59  ;;  %1611 = vmatpush.msra.mxu2 %v3473_v29 }
 0x14b   : > { %1688 = vmatpush.msra.mxu3 %v1687_v3  ;;  %1104 = vmatmul.f32.vlgmr.msrb.gmra.mxu1 %v3047_v63  ;;  %v3565_v28 = vand.u32 4294901760, %v3551_v50 }
 0x14c   : > { %1702 = vmatpush.msrb.mxu0 %v2866_v46  ;;  %1253 = vmatpush.msra.mxu1 %v3288_v16  ;;  %v4109_v46 = vand.u32 4294901760, %v3370_v35  ;;  %v1583_v16 = vld [vmem:[#allocation2 + $0xe0] sm:$0xff] }
 0x14d   : > { %2591 = vmatpush.msk.msrb.mxu3 %vm172_vm8, %v4098_v25  ;;  %1613 = vmatpush.msra.mxu2 %v3449_v41  ;;  %v1617_v59 = vsub.f32 %v3551_v50, %v3565_v28  ;;  %v3593_v44 = vand.u32 4294901760, %v1583_v16 }
 0x14e   : > { %1705 = vmatpush.msrb.mxu0 %v3370_v35  ;;  %1255 = vmatpush.msra.mxu1 %v3320_v23  ;;  %v4112_v23 = vand.u32 4294901760, %v3404_v14  ;;  %v1571_v35 = vld [vmem:[#allocation2 + $0x80] sm:$0xff] }
 0x14f   : > { %1778 = vmatpush.msrb.mxu2 %v2870_v51  ;;  %1829 = vmatpush.msrb.mxu3 %v3347_v31  ;;  %v4110_v51 = vand.u32 4294901760, %v3376_v56 }
 0x150   : > { %1708 = vmatpush.msrb.mxu0 %v3376_v56  ;;  %1257 = vmatpush.msra.mxu1 %v3326_v39  ;;  %v3591_v39 = vand.u32 4294901760, %v1617_v59  ;;  %v3624_v56 = vand.u32 4294901760, %v1574_v8 }
 0x151   : > { %1782 = vmatpush.msrb.mxu2 %v4109_v46  ;;  %1831 = vmatpush.msrb.mxu3 %v3338_v9  ;;  %v3715_v46 = vand.u32 4294901760, %v1572_v21 }
 0x152   : > { %1230 = vmatmul.f32.vlgmr.msra.gmra.mxu0 %v3047_v63  ;;  %1259 = vmatpush.msra.mxu1 %v3329_v61  ;;  %v1580_v61 = vld [vmem:[#allocation2 + $0xc8] sm:$0xff] }
 0x153   : > { %1786 = vmatpush.msrb.mxu2 %v4110_v51  ;;  %1711 = vmatpush.msrb.mxu0 %v3390_v18  ;;  %v3604_v10 = vand.u32 4294901760, %v1580_v61  ;;  %v1569_v51 = vld [vmem:[#allocation2 + $0x70] sm:$0xff] }
 0x154   : > { %1833 = vmatpush.msrb.mxu3 %v3357_v40  ;;  %1261 = vmatmul.f32.vlgmr.msra.gmra.mxu1 %v3047_v63  ;;  %v4113_v63 = vand.u32 4294901760, %v3424_v32 }
 0x155   : > { %1790 = vmatpush.msrb.mxu2 %v4111_v54  ;;  %1714 = vmatpush.msrb.mxu0 %v3404_v14  ;;  %v3635_v14 = vand.u32 4294901760, %v1571_v35 }
 0x156   : > { %2592 = vmatpush.msk.msrb.mxu1 %vm172_vm8, %v4098_v25  ;;  %1835 = vmatpush.msrb.mxu3 %v3372_v20  ;;  %v4114_v25 = vand.u32 4294901760, %v3433_v26 }
 0x157   : > { %1717 = vmatpush.msrb.mxu0 %v3424_v32  ;;  %1794 = vmatpush.msrb.mxu2 %v4112_v23  ;;  %v3639_v32 = vand.u32 4294901760, %v1568_v57  ;;  %v3723_v23 = vsub.f32 %v1556_v27, %v3690_v24 }
 0x158   : > { %1745 = vmatpush.msrb.mxu1 %v3347_v31  ;;  %1837 = vmatpush.msrb.mxu3 %v3392_v53  ;;  %v1577_v31 = vld [vmem:[#allocation2 + $0xb0] sm:$0xff] }
 0x159   : > { %1720 = vmatpush.msrb.mxu0 %v3433_v26  ;;  %1798 = vmatpush.msrb.mxu2 %v4113_v63  ;;  %v1565_v26 = vld [vmem:[#allocation2 + $0x50] sm:$0xff] }
 0x15a   : > { %1747 = vmatpush.msrb.mxu1 %v3338_v9  ;;  %1839 = vmatpush.msrb.mxu3 %v3416_v4  ;;  %v3607_v9 = vsub.f32 %v1583_v16, %v3593_v44  ;;  %v3657_v42 = vand.u32 4294901760, %v1565_v26 }
 0x15b   : > { %1723 = vmatpush.msrb.mxu0 %v3486_v49  ;;  %1802 = vmatpush.msrb.mxu2 %v4114_v25  ;;  %v1566_v25 = vld [vmem:[#allocation2 + $0x58] sm:$0xff] }
 0x15c   : > { %1749 = vmatpush.msrb.mxu1 %v3357_v40  ;;  %1841 = vmatpush.msrb.mxu3 %v3468_v48  ;;  %v3614_v40 = vand.u32 4294901760, %v1577_v31  ;;  %v1894_v18 = vand.u32 4294901760, %v3607_v9  ;;  %v3687_v1 = vsub.f32 %v1565_v26, %v3657_v42  ;;  %v3750_v27 = vand.u32 4294901760, %v1566_v25 }
 0x15d   : > { %1619 = vmatmul.f32.vlgmr.msra.gmra.mxu2 %v3591_v39  ;;  %1726 = vmatpush.msrb.mxu0 %v3489_v19  ;;  %v1562_v19 = vld [vmem:[#allocation2 + $0x38] sm:$0xff] }
 0x15e   : > { %1751 = vmatpush.msrb.mxu1 %v3372_v20  ;;  %1806 = vmatpush.msrb.mxu2 %v1673_v30  ;;  %v3622_v20 = vsub.f32 %v1580_v61, %v3604_v10  ;;  %v3672_v60 = vand.u32 4294901760, %v1562_v19  ;;  %v1930_v16 = vand.u32 4294901760, %v3687_v1  ;;  %v3729_v61 = vsub.f32 %v1575_v45, %v3697_v43 }
 0x15f   : > { %1843 = vmatpush.msrb.mxu3 %v3473_v29  ;;  %1729 = vmatpush.msrb.mxu0 %v3476_v34  ;;  %v3647_v34 = vsub.f32 %v1574_v8, %v3624_v56 }
 0x160   : > { %1690 = vmatmul.f32.vlgmr.msra.gmra.mxu3 %v3535_v37  ;;  %1753 = vmatpush.msrb.mxu1 %v3392_v53  ;;  %v3633_v53 = vsub.f32 %v1577_v31, %v3614_v40  ;;  %v1900_v49 = vand.u32 4294901760, %v3622_v20  ;;  %v3704_v3 = vsub.f32 %v1562_v19, %v3672_v60  ;;  %v1931_v58 = vsub.f32 %v3687_v1, %v1930_v16 }
 0x161   : > { %1810 = vmatpush.msrb.mxu2 %v1679_v5  ;;  %1845 = vmatpush.msrb.mxu3 %v3449_v41  ;;  %v1578_v5 = vld [vmem:[#allocation2 + $0xb8] sm:$0xff]  ;;  %v2175_v45 = vand.u32 4294901760, %v3729_v61 }
 0x162   : > { %1858 = vmatpush.msra.mxu0 %v3593_v44  ;;  %1755 = vmatpush.msrb.mxu1 %v3416_v4  ;;  %v1895_v4 = vsub.f32 %v3607_v9, %v1894_v18  ;;  %v1906_v30 = vand.u32 4294901760, %v3633_v53  ;;  %v1901_v15 = vsub.f32 %v3622_v20, %v1900_v49  ;;  %v3679_v52 = vand.u32 4294901760, %v1578_v5 }
 0x163   : > { %2006 = vmatpush.msra.mxu3 %v3593_v44  ;;  %1814 = vmatpush.msrb.mxu2 %v1685_v36  ;;  %v3663_v36 = vsub.f32 %v1568_v57, %v3639_v32  ;;  %v3736_v57 = vand.u32 4294901760, %v1569_v51 }
 0x164   : > { %1860 = vmatpush.msra.mxu0 %v3604_v10  ;;  %1757 = vmatpush.msrb.mxu1 %v3468_v48  ;;  %v3655_v48 = vsub.f32 %v1571_v35, %v3635_v14  ;;  %v1896_v11 = vand.u32 4294901760, %v1895_v4  ;;  %v1907_v47 = vsub.f32 %v3633_v53, %v1906_v30  ;;  %v1902_v55 = vand.u32 4294901760, %v1901_v15 }
 0x165   : > { %1965 = vmatpush.msra.mxu2 %v3607_v9  ;;  %2008 = vmatpush.msra.mxu3 %v3604_v10  ;;  %v1924_v62 = vand.u32 4294901760, %v3663_v36  ;;  %v3713_v38 = vsub.f32 %v1578_v5, %v3679_v52  ;;  %v4087_v35 = vand.u32 4294901760, %v3704_v3  ;;  %v4085_v4 = vand.u32 4294901760, %v3710_v12 }
 0x166   : > { %1816 = vmatmul.f32.vlgmr.msrb.gmra.mxu2 %v3535_v37  ;;  %1862 = vmatpush.msra.mxu0 %v3614_v40  ;;  %v1918_v17 = vand.u32 4294901760, %v3655_v48  ;;  %v1908_v54 = vand.u32 4294901760, %v1907_v47  ;;  %v4086_v5 = vand.u32 4294901760, %v3723_v23 }
 0x167   : > { %1968 = vmatpush.msra.mxu2 %v3622_v20  ;;  %2010 = vmatpush.msra.mxu3 %v3614_v40  ;;  %v1925_v8 = vsub.f32 %v3663_v36, %v1924_v62  ;;  %v4084_v26 = vand.u32 4294901760, %v3713_v38 }
 0x168   : > { %1759 = vmatpush.msrb.mxu1 %v3473_v29  ;;  %1732 = vmatmul.f32.vlgmr.msrb.gmra.mxu0 %v3551_v50  ;;  %v1912_v29 = vand.u32 4294901760, %v3647_v34  ;;  %v1919_v59 = vsub.f32 %v3655_v48, %v1918_v17 }
 0x169   : > { %1847 = vmatmul.f32.vlgmr.msrb.gmra.mxu3 %v3535_v37  ;;  %1864 = vmatpush.msra.mxu0 %v3624_v56  ;;  %v1926_v47 = vand.u32 4294901760, %v1925_v8  ;;  %v1557_v8 = vld [vmem:[#allocation2 + $0x10] sm:$0xff] }
 0x16a   : > { %1971 = vmatpush.msra.mxu2 %v3633_v53  ;;  %2012 = vmatpush.msra.mxu3 %v3624_v56  ;;  %v1913_v13 = vsub.f32 %v3647_v34, %v1912_v29  ;;  %v1920_v19 = vand.u32 4294901760, %v1919_v59 }
 0x16b   : > { %1761 = vmatpush.msrb.mxu1 %v3449_v41  ;;  %1866 = vmatpush.msra.mxu0 %v3635_v14  ;;  %v3695_v41 = vsub.f32 %v1581_v22, %v3665_v6  ;;  %v3743_v22 = vsub.f32 %v1572_v21, %v3715_v46  ;;  %v1937_v21 = vsub.f32 %v3704_v3, %v4087_v35 }
 0x16c   : > { %1765 = vmatmul.f32.vlgmr.msrb.gmra.mxu1 %v3565_v28  ;;  %1974 = vmatpush.msra.mxu2 %v3647_v34  ;;  %v1914_v31 = vand.u32 4294901760, %v1913_v13  ;;  %v2170_v13 = vsub.f32 %v3713_v38, %v4084_v26  ;;  %v3781_v26 = vsub.f32 %v1566_v25, %v3750_v27  ;;  %v3793_v25 = vand.u32 4294901760, %v1557_v8 }
 0x16d   : > { %1897 = vmatpush.msra.mxu1 %v1896_v11  ;;  %2014 = vmatpush.msra.mxu3 %v3635_v14  ;;  %v4083_v63 = vand.u32 4294901760, %v3695_v41  ;;  %v1563_v11 = vld [vmem:[#allocation2 + $0x40] sm:$0xff] }
 0x16e   : > { %1868 = vmatpush.msra.mxu0 %v3639_v32  ;;  %1977 = vmatpush.msra.mxu2 %v3655_v48  ;;  %v3773_v59 = vand.u32 4294901760, %v1563_v11 }
 0x16f   : > { %1903 = vmatpush.msra.mxu1 %v1902_v55  ;;  %2016 = vmatpush.msra.mxu3 %v3639_v32  ;;  %v2164_v15 = vsub.f32 %v3695_v41, %v4083_v63  ;;  %v3763_v55 = vsub.f32 %v1569_v51, %v3736_v57  ;;  %v1932_v51 = vand.u32 4294901760, %v1931_v58  ;;  %v2181_v63 = vand.u32 4294901760, %v3743_v22 }
 0x170   : > { %1870 = vmatpush.msra.mxu0 %v3657_v42  ;;  %1980 = vmatpush.msra.mxu2 %v3663_v36  ;;  %v1938_v58 = vand.u32 4294901760, %v1937_v21  ;;  %v3799_v9 = vsub.f32 %v1563_v11, %v3773_v59  ;;  %v3815_v11 = vsub.f32 %v1557_v8, %v3793_v25  ;;  %v4116_v8 = vand.u32 4294901760, %v3710_v12 }
 0x171   : > { %1909 = vmatpush.msra.mxu1 %v1908_v54  ;;  %2018 = vmatpush.msra.mxu3 %v3657_v42  ;;  %v1943_v54 = vsub.f32 %v3710_v12, %v4085_v4  ;;  %v2165_v4 = vand.u32 4294901760, %v2164_v15  ;;  %v2182_v21 = vsub.f32 %v3743_v22, %v2181_v63 }
 0x172   : > { %1872 = vmatpush.msra.mxu0 %v3672_v60  ;;  %1983 = vmatpush.msra.mxu2 %v3687_v1  ;;  %v2199_v53 = vand.u32 4294901760, %v3799_v9 }
 0x173   : > { %1915 = vmatpush.msra.mxu1 %v1914_v31  ;;  %2020 = vmatpush.msra.mxu3 %v3672_v60  ;;  %v1560_v31 = vld [vmem:[#allocation2 + $0x28] sm:$0xff] }
 0x174   : > { %1874 = vmatpush.msra.mxu0 %v3677_v0  ;;  %1986 = vmatpush.msra.mxu2 %v3704_v3  ;;  %v3791_v35 = vand.u32 4294901760, %v1560_v31  ;;  %v2200_v48 = vsub.f32 %v3799_v9, %v2199_v53 }
 0x175   : > { %1921 = vmatpush.msra.mxu1 %v1920_v19  ;;  %2022 = vmatpush.msra.mxu3 %v3677_v0  ;;  %v1949_v19 = vsub.f32 %v3723_v23, %v4086_v5  ;;  %v2187_v5 = vand.u32 4294901760, %v3763_v55 }
 0x176   : > { %1876 = vmatpush.msra.mxu0 %v3690_v24  ;;  %1989 = vmatpush.msra.mxu2 %v3710_v12  ;;  %v2201_v1 = vand.u32 4294901760, %v2200_v48 }
 0x177   : > { %1927 = vmatpush.msra.mxu1 %v1926_v47  ;;  %2024 = vmatpush.msra.mxu3 %v3690_v24  ;;  %v2176_v47 = vsub.f32 %v3729_v61, %v2175_v45  ;;  %v1950_v15 = vand.u32 4294901760, %v1949_v19 }
 0x178   : > { %2041 = vmatpush.msrb.mxu0 %v1894_v18  ;;  %1992 = vmatpush.msra.mxu2 %v3723_v23  ;;  %v2171_v18 = vand.u32 4294901760, %v2170_v13 }
 0x179   : > { %2160 = vmatpush.msrb.mxu3 %v3315_v2  ;;  %1933 = vmatpush.msra.mxu1 %v1932_v51  ;;  %v1944_v2 = vand.u32 4294901760, %v1943_v54  ;;  %v2193_v51 = vand.u32 4294901760, %v3781_v26  ;;  %v2177_v20 = vand.u32 4294901760, %v2176_v47  ;;  %v2211_v54 = vand.u32 4294901760, %v3815_v11 }
 0x17a   : > { %2045 = vmatpush.msrb.mxu0 %v1900_v49  ;;  %2121 = vmatpush.msrb.mxu2 %v3222_v7  ;;  %v2188_v49 = vsub.f32 %v3763_v55, %v2187_v5 }
 0x17b   : > { %2166 = vmatpush.msrb.mxu3 %v2165_v4  ;;  %1939 = vmatpush.msra.mxu1 %v1938_v58  ;;  %v3812_v4 = vsub.f32 %v1560_v31, %v3791_v35  ;;  %v2194_v13 = vsub.f32 %v3781_v26, %v2193_v51  ;;  %v2212_v36 = vsub.f32 %v3815_v11, %v2211_v54 }
 0x17c   : > { %2049 = vmatpush.msrb.mxu0 %v1906_v30  ;;  %2123 = vmatpush.msrb.mxu2 %v3665_v6  ;;  %v2183_v30 = vand.u32 4294901760, %v2182_v21  ;;  %v2189_v34 = vand.u32 4294901760, %v2188_v49 }
 0x17d   : > { %2172 = vmatpush.msrb.mxu3 %v2171_v18  ;;  %1945 = vmatpush.msra.mxu1 %v1944_v2  ;;  %v4117_v2 = vand.u32 4294901760, %v3723_v23  ;;  %v4118_v23 = vld [vmem:[#allocation3_spill] sm:$0xff] }
 0x17e   : > { %2053 = vmatpush.msrb.mxu0 %v1912_v29  ;;  %2125 = vmatpush.msrb.mxu2 %v3679_v52  ;;  %v2205_v29 = vand.u32 4294901760, %v3812_v4 }
 0x17f   : > { %2178 = vmatpush.msrb.mxu3 %v2177_v20  ;;  %1951 = vmatpush.msra.mxu1 %v1950_v15 }
 0x180   : > { %2057 = vmatpush.msrb.mxu0 %v1918_v17  ;;  %2127 = vmatpush.msrb.mxu2 %v3697_v43 }
 0x181   : > { %2090 = vmatpush.msrb.mxu1 %v3593_v44  ;;  %2184 = vmatpush.msrb.mxu3 %v2183_v30  ;;  %v2195_v44 = vand.u32 4294901760, %v2194_v13 }
 0x182   : > { %2061 = vmatpush.msrb.mxu0 %v1924_v62  ;;  %2129 = vmatpush.msrb.mxu2 %v3715_v46  ;;  %v4115_v62 = vand.u32 4294901760, %v3704_v3  ;;  %v2213_v3 = vand.u32 4294901760, %v2212_v36 }
 0x183   : > { %2092 = vmatpush.msrb.mxu1 %v3604_v10  ;;  %2190 = vmatpush.msrb.mxu3 %v2189_v34  ;;  %v508_v17 = vpop.f32.mrf.mxu0  ;;  %v2206_v10 = vsub.f32 %v3812_v4, %v2205_v29 }
 0x184   : > { %2065 = vmatpush.msrb.mxu0 %v1930_v16  ;;  %2131 = vmatpush.msrb.mxu2 %v3736_v57 }
 0x185   : > { %2094 = vmatpush.msrb.mxu1 %v3614_v40  ;;  %2196 = vmatpush.msrb.mxu3 %v2195_v44  ;;  %v2207_v19 = vand.u32 4294901760, %v2206_v10 }
 0x186   : > { %1995 = vmatmul.f32.vlgmr.msra.gmra.mxu2 %v3551_v50  ;;  %2069 = vmatpush.msrb.mxu0 %v4115_v62  ;;  %v579_v16 = vpop.f32.mrf.mxu1 }
 0x187   : > { %2096 = vmatpush.msrb.mxu1 %v3624_v56  ;;  %2133 = vmatpush.msrb.mxu2 %v3750_v27  ;;  %v580_v40 = vadd.f32 %v579_v16, %v508_v17  ;;  %v621_v31 = vpop.f32.mrf.mxu2 }
 0x188   : > { %2202 = vmatpush.msrb.mxu3 %v2201_v1  ;;  %1882 = vmatmul.f32.vlgmr.msra.gmra.mxu0 %v3591_v39 }
 0x189   : > { %2028 = vmatmul.f32.vlgmr.msra.gmra.mxu3 %v3565_v28  ;;  %2073 = vmatpush.msrb.mxu0 %v4116_v8  ;;  %v622_v47 = vadd.f32 %v621_v31, %v580_v40 }
 0x18a   : > { %2098 = vmatpush.msrb.mxu1 %v3635_v14  ;;  %2135 = vmatpush.msrb.mxu2 %v3773_v59  ;;  %v654_v56 = vpop.f32.mrf.mxu3 }
 0x18b   : > { %2208 = vmatpush.msrb.mxu3 %v2207_v19  ;;  %1953 = vmatmul.f32.vlgmr.msra.gmra.mxu1 %v3535_v37  ;;  %v655_v58 = vadd.f32 %v654_v56, %v622_v47 }
 0x18c   : > { %2077 = vmatpush.msrb.mxu0 %v4117_v2  ;;  %2100 = vmatpush.msrb.mxu1 %v3639_v32  ;;  %v4119_v32 = vand.u32 4294901760, %v3695_v41 }
 0x18d   : > { %2137 = vmatpush.msrb.mxu2 %v3791_v35  ;;  %2214 = vmatpush.msrb.mxu3 %v2213_v3  ;;  %v705_v12 = vpop.f32.mrf.mxu0 }
 0x18e   : > { %2228 = vmatpush.msra.mxu0 %v3236_v33  ;;  %v706_v14 = vadd.f32 %v705_v12, %v655_v58  ;;  %2102 = vmatpush.msrb.mxu1 %v3657_v42  ;;  %v4120_v42 = vand.u32 4294901760, %v3713_v38 }
 0x18f   : > { %2353 = vmatpush.msra.mxu3 %v3222_v7  ;;  %2139 = vmatpush.msrb.mxu2 %v3793_v25  ;;  %v736_v18 = vpop.f32.mrf.mxu1 }
 0x190   : > { %2231 = vmatpush.msra.mxu0 %v3695_v41  ;;  %2104 = vmatpush.msrb.mxu1 %v3672_v60  ;;  %v3877_v33 = vadd.f32 %v736_v18, %v706_v14 }
 0x191   : > { %2304 = vmatpush.msra.mxu2 %v4118_v23  ;;  %2355 = vmatpush.msra.mxu3 %v3665_v6 }
 0x192   : > { %2079 = vmatmul.f32.vlgmr.msrb.gmra.mxu0 %v3535_v37  ;;  %1266 = vst.msk [vmem:[%s3873_s3] sm:$0x3f] %vm1265_vm12, %v3877_v33  ;;  %2106 = vmatpush.msrb.mxu1 %v3677_v0 }
 0x193   : > { %2308 = vmatpush.msra.mxu2 %v4119_v32  ;;  %2234 = vmatpush.msra.mxu0 %v3713_v38 }
 0x194   : > { %2357 = vmatpush.msra.mxu3 %v3679_v52  ;;  %2108 = vmatpush.msrb.mxu1 %v3690_v24 }
 0x195   : > { %2312 = vmatpush.msra.mxu2 %v4120_v42  ;;  %2237 = vmatpush.msra.mxu0 %v3729_v61 }
 0x196   : > { %2359 = vmatpush.msra.mxu3 %v3697_v43  ;;  %2110 = vmatmul.f32.vlgmr.msrb.gmra.mxu1 %v3535_v37 }
 0x197   : > { %2316 = vmatpush.msra.mxu2 %v2175_v45  ;;  %2240 = vmatpush.msra.mxu0 %v3743_v22 }
 0x198   : > { %2269 = vmatpush.msra.mxu1 %v3222_v7  ;;  %2361 = vmatpush.msra.mxu3 %v3715_v46 }
 0x199   : > { %2243 = vmatpush.msra.mxu0 %v3763_v55  ;;  %2320 = vmatpush.msra.mxu2 %v2181_v63 }
 0x19a   : > { %2271 = vmatpush.msra.mxu1 %v3665_v6  ;;  %2363 = vmatpush.msra.mxu3 %v3736_v57 }
 0x19b   : > { %2246 = vmatpush.msra.mxu0 %v3781_v26  ;;  %2324 = vmatpush.msra.mxu2 %v2187_v5 }
 0x19c   : > { %2273 = vmatpush.msra.mxu1 %v3679_v52  ;;  %2365 = vmatpush.msra.mxu3 %v3750_v27 }
 0x19d   : > { %2249 = vmatpush.msra.mxu0 %v3799_v9  ;;  %2328 = vmatpush.msra.mxu2 %v2193_v51 }
 0x19e   : > { %2275 = vmatpush.msra.mxu1 %v3697_v43  ;;  %2367 = vmatpush.msra.mxu3 %v3773_v59  ;;  %v771_v7 = vpop.f32.mrf.mxu2 }
 0x19f   : > { %2145 = vmatmul.f32.vlgmr.msrb.gmra.mxu2 %v3591_v39  ;;  %2252 = vmatpush.msra.mxu0 %v3812_v4 }
 0x1a0   : > { %2277 = vmatpush.msra.mxu1 %v3715_v46  ;;  %2332 = vmatpush.msra.mxu2 %v2199_v53 }
 0x1a1   : > { %2369 = vmatpush.msra.mxu3 %v3791_v35  ;;  %1278 = vrot.lane.b32.xlu2 %v3877_v33, %s2611_s4  ;;  %v842_v6 = vpop.f32.mrf.mxu3 }
 0x1a2   : > { %2216 = vmatmul.f32.vlgmr.msrb.gmra.mxu3 %v3535_v37  ;;  %2279 = vmatpush.msra.mxu1 %v3736_v57  ;;  %v843_v60 = vadd.f32 %v842_v6, %v771_v7 }
 0x1a3   : > { %2336 = vmatpush.msra.mxu2 %v2205_v29  ;;  %1273 = vrot.lane.b32.xlu1 %v3877_v33, %s2612_s5  ;;  %v884_v39 = vpop.f32.mrf.mxu0 }
 0x1a4   : > { %2281 = vmatpush.msra.mxu1 %v3750_v27  ;;  %1268 = vrot.lane.b32.xlu0 %v3877_v33, %s2602_s17  ;;  %v885_v0 = vadd.f32 %v884_v39, %v843_v60 }
 0x1a5   : > { %2340 = vmatpush.msra.mxu2 %v2211_v54  ;;  %2255 = vmatpush.msra.mxu0 %v3815_v11 }
 0x1a6   : > { %2283 = vmatpush.msra.mxu1 %v3773_v59  ;;  %2371 = vmatpush.msra.mxu3 %v3793_v25 }
 0x1a7   : > { %2342 = vmatmul.f32.vlgmr.msra.gmra.mxu2 %v3535_v37  ;;  %2258 = vmatmul.f32.vlgmr.msra.gmra.mxu0 %v3551_v50  ;;  %v917_v52 = vpop.f32.mrf.mxu1  ;;  %v968_v24 = vpop.f32.mrf.mxu2 }
 0x1a8   : > { %2285 = vmatpush.msra.mxu1 %v3791_v35  ;;  %v918_v41 = vadd.f32 %v917_v52, %v885_v0 }
 0x1a9   : > { %1293 = vrot.lane.b32.xlu2 %v3877_v33, %s2613_s6 }
 0x1aa   : > { %2373 = vmatmul.f32.vlgmr.msra.gmra.mxu3 %v3535_v37  ;;  %2287 = vmatpush.msra.mxu1 %v3793_v25  ;;  %v969_v43 = vadd.f32 %v968_v24, %v918_v41  ;;  %v999_v38 = vpop.f32.mrf.mxu3 }
 0x1ab   : > { %2291 = vmatmul.f32.vlgmr.msra.gmra.mxu1 %v3565_v28  ;;  %1288 = vrot.lane.b32.xlu1 %v3877_v33, %s2614_s7 }
 0x1ac   : > { %1283 = vrot.lane.b32.xlu0 %v3877_v33, %s2615_s8  ;;  %v1000_v50 = vadd.f32 %v999_v38, %v969_v43 }
 0x1b1   : > { %1308 = vrot.lane.b32.xlu2 %v1000_v50, %s2616_s10 }
 0x1b3   : > { %1301 = vrot.lane.b32.xlu1 %v1000_v50, %s2617_s11 }
 0x1b4   : > { %1299 = vrot.lane.b32.xlu0 %v3877_v33, %s2617_s11 }
 0x1b9   : > { %1320 = vrot.lane.b32.xlu2 %v1000_v50, %s2618_s12 }
 0x1bb   : > { %1316 = vrot.lane.b32.xlu1 %v1000_v50, %s2605_s20 }
 0x1bc   : > { %1312 = vrot.lane.b32.xlu0 %v1000_v50, %s2603_s18 }
 0x1c1   : > { %1333 = vrot.lane.b32.xlu2 %v1000_v50, %s2619_s13 }
 0x1c3   : > { %1328 = vrot.lane.b32.xlu1 %v1000_v50, %s2620_s14 }
 0x1c4   : > { %1324 = vrot.lane.b32.xlu0 %v1000_v50, %s2621_s15 }
 0x1c5   : > { %v1034_v37 = vpop.f32.mrf.mxu0 }
 0x1c8   : > { %v1105_v28 = vpop.f32.mrf.mxu1 }
 0x1c9   : > { %v1106_v46 = vadd.f32 %v1105_v28, %v1034_v37  ;;  %v1147_v63 = vpop.f32.mrf.mxu2 }
 0x1cb   : > { %v1148_v61 = vadd.f32 %v1147_v63, %v1106_v46 }
 0x1cc   : > { %v1180_v35 = vpop.f32.mrf.mxu3 }
 0x1cd   : > { %v1181_v57 = vadd.f32 %v1180_v35, %v1148_v61 }
 0x1cf   : > { %v1231_v26 = vpop.f32.mrf.mxu0 }
 0x1d0   : > { %v1232_v22 = vadd.f32 %v1231_v26, %v1181_v57 }
 0x1d1   : > { %v1262_v5 = vpop.f32.mrf.mxu1 }
 0x1d2   : > { %v1263_v27 = vadd.f32 %v1262_v5, %v1232_v22 }
 0x1d4   : > { %1335 = vrot.lane.b32.xlu0 %v1263_v27, %s2619_s13  ;;  %1341 = vrot.lane.b32.xlu1 %v1263_v27, %s2622_s16 }
 0x1e0   : > { %v1620_v45 = vpop.f32.mrf.mxu2 }
 0x1e3   : > { %v1691_v55 = vpop.f32.mrf.mxu3 }
 0x1e4   : > { %v1692_v59 = vadd.f32 %v1691_v55, %v1620_v45 }
 0x1e5   : > { %v1733_v25 = vpop.f32.mrf.mxu0 }
 0x1e6   : > { %v1734_v9 = vadd.f32 %v1733_v25, %v1692_v59 }
 0x1e9   : > { %v1766_v15 = vpop.f32.mrf.mxu1  ;;  %v1817_v21 = vpop.f32.mrf.mxu2 }
 0x1ea   : > { %v1767_v51 = vadd.f32 %v1766_v15, %v1734_v9 }
 0x1ec   : > { %v1818_v20 = vadd.f32 %v1817_v21, %v1767_v51  ;;  %v1848_v49 = vpop.f32.mrf.mxu3 }
 0x1ee   : > { %v3960_v4 = vadd.f32 %v1848_v49, %v1818_v20 }
 0x1f0   : > { %2380 = vrot.lane.b32.xlu2 %v3960_v4, %s2602_s17  ;;  %2384 = vrot.lane.b32.xlu0 %v3960_v4, %s2612_s5  ;;  %2535 = vst.msk [vmem:[%s3873_s3 + $0x10] sm:$0x3f] %vm1265_vm12, %v3960_v4 }
 0x1f1   : > { %2388 = vrot.lane.b32.xlu1 %v3960_v4, %s2611_s4 }
 0x1f8   : > { %2396 = vrot.lane.b32.xlu2 %v3960_v4, %s2614_s7  ;;  %2392 = vrot.lane.b32.xlu0 %v3960_v4, %s2615_s8 }
 0x1fb   : > { %v1279_v11 = vpop.permute.xlu2 %1278 }
 0x200   : > { %2400 = vrot.lane.b32.xlu0 %v3960_v4, %s2613_s6 }
 0x203   : > { %v1294_v53 = vpop.permute.xlu2 %1293 }
 0x205   : > { %v1883_v30 = vpop.f32.mrf.mxu0 }
 0x208   : > { %v1954_v13 = vpop.f32.mrf.mxu1 }
 0x209   : > { %v1955_v34 = vadd.f32 %v1954_v13, %v1883_v30  ;;  %v1996_v29 = vpop.f32.mrf.mxu2 }
 0x20b   : > { %v1997_v54 = vadd.f32 %v1996_v29, %v1955_v34  ;;  %v1309_v48 = vpop.permute.xlu2 %1308 }
 0x20c   : > { %v2029_v44 = vpop.f32.mrf.mxu3  ;;  %1311 = vst.msk [vmem:[%s3873_s3 + $0x8] sm:$0x3f] %vm1265_vm12, %v1309_v48 }
 0x20d   : > { %v2030_v17 = vadd.f32 %v2029_v44, %v1997_v54 }
 0x20f   : > { %v2080_v10 = vpop.f32.mrf.mxu0 }
 0x210   : > { %v2081_v36 = vadd.f32 %v2080_v10, %v2030_v17 }
 0x213   : > { %v2111_v62 = vpop.f32.mrf.mxu1  ;;  %v1321_v39 = vpop.permute.xlu2 %1320 }
 0x214   : > { %v2112_v1 = vadd.f32 %v2111_v62, %v2081_v36 }
 0x215   : > { %v1274_v16 = vpop.permute.xlu1 %1273 }
 0x216   : > { %v1269_v40 = vpop.permute.xlu0 %1268  ;;  %2416 = vrot.lane.b32.xlu2 %v2112_v1, %s2603_s18  ;;  %2412 = vrot.lane.b32.xlu1 %v2112_v1, %s2616_s10 }
 0x217   : > { %1272 = vst.msk [vmem:[%s3873_s3] sm:$0x3f] %vm1271_vm13, %v1269_v40  ;;  %2420 = vrot.lane.b32.xlu0 %v2112_v1, %s2605_s20 }
 0x218   : > { %1277 = vst.msk [vmem:[%s3873_s3] sm:$0x3f] %vm1276_vm14, %v1274_v16 }
 0x219   : > { %1282 = vst.msk [vmem:[%s3873_s3] sm:$0x3f] %vm1281_vm15, %v1279_v11 }
 0x21b   : > { %v1334_v24 = vpop.permute.xlu2 %1333 }
 0x21d   : > { %v1289_v31 = vpop.permute.xlu1 %1288 }
 0x21e   : > { %v1284_v8 = vpop.permute.xlu0 %1283  ;;  %2424 = vrot.lane.b32.xlu2 %v2112_v1, %s2618_s12  ;;  %2428 = vrot.lane.b32.xlu1 %v2112_v1, %s2621_s15 }
 0x21f   : > { %1287 = vst.msk [vmem:[%s3873_s3] sm:$0x3f] %vm1286_vm0, %v1284_v8  ;;  %2432 = vrot.lane.b32.xlu0 %v2112_v1, %s2620_s14 }
 0x220   : > { %1292 = vst.msk [vmem:[%s3873_s3] sm:$0x3f] %vm1291_vm1, %v1289_v31 }
 0x221   : > { %1297 = vst.msk [vmem:[%s3873_s3] sm:$0x3f] %vm1296_vm2, %v1294_v53 }
 0x222   : > { %v2146_v19 = vpop.f32.mrf.mxu2 }
 0x224   : > { %v2259_v3 = vpop.f32.mrf.mxu0 }
 0x225   : > { %v2217_v47 = vpop.f32.mrf.mxu3  ;;  %v1302_v56 = vpop.permute.xlu1 %1301 }
 0x226   : > { %v2218_v58 = vadd.f32 %v2217_v47, %v2146_v19  ;;  %v1300_v2 = vpop.permute.xlu0 %1299  ;;  %2437 = vrot.lane.b32.xlu1 %v2112_v1, %s2619_s13 }
 0x227   : > { %v1304_v12 = vsel %vm1303_vm3, %v1300_v2, %v1302_v56 }
 0x228   : > { %v2260_v14 = vadd.f32 %v2259_v3, %v2218_v58  ;;  %v2292_v23 = vpop.f32.mrf.mxu1  ;;  %1307 = vst.msk [vmem:[%s3873_s3] sm:$0x3f] %vm1306_vm4, %v1304_v12 }
 0x22a   : > { %v2293_v18 = vadd.f32 %v2292_v23, %v2260_v14  ;;  %v2343_v33 = vpop.f32.mrf.mxu2 }
 0x22c   : > { %v2344_v32 = vadd.f32 %v2343_v33, %v2293_v18 }
 0x22d   : > { %v2374_v42 = vpop.f32.mrf.mxu3  ;;  %v1317_v7 = vpop.permute.xlu1 %1316 }
 0x22e   : > { %v2375_v6 = vadd.f32 %v2374_v42, %v2344_v32  ;;  %v1313_v60 = vpop.permute.xlu0 %1312  ;;  %2405 = vrot.lane.b32.xlu1 %v3960_v4, %s2617_s11 }
 0x22f   : > { %1315 = vst.msk [vmem:[%s3873_s3 + $0x8] sm:$0x3f] %vm1271_vm13, %v1313_v60 }
 0x230   : > { %2439 = vrot.lane.b32.xlu2 %v2375_v6, %s2619_s13  ;;  %2444 = vrot.lane.b32.xlu0 %v2375_v6, %s2622_s16  ;;  %1319 = vst.msk [vmem:[%s3873_s3 + $0x8] sm:$0x3f] %vm1276_vm14, %v1317_v7 }
 0x231   : > { %1323 = vst.msk [vmem:[%s3873_s3 + $0x8] sm:$0x3f] %vm1281_vm15, %v1321_v39 }
 0x235   : > { %v1329_v0 = vpop.permute.xlu1 %1328 }
 0x236   : > { %v1325_v52 = vpop.permute.xlu0 %1324 }
 0x237   : > { %1327 = vst.msk [vmem:[%s3873_s3 + $0x8] sm:$0x3f] %vm1286_vm0, %v1325_v52 }
 0x238   : > { %2407 = vrot.lane.b32.xlu2 %v2112_v1, %s2617_s11  ;;  %1331 = vst.msk [vmem:[%s3873_s3 + $0x8] sm:$0x3f] %vm1291_vm1, %v1329_v0 }
 0x246   : > { %v1336_v41 = vpop.permute.xlu0 %1335  ;;  %v1342_v43 = vpop.permute.xlu1 %1341 }
 0x247   : > { %v1338_v38 = vsel %vm1337_vm5, %v1334_v24, %v1336_v41 }
 0x248   : > { %1340 = vst.msk [vmem:[%s3873_s3 + $0x8] sm:$0x3f] %vm1296_vm2, %v1338_v38 }
 0x249   : > { %1344 = vst.msk [vmem:[%s3873_s3 + $0x8] sm:$0x3f] %vm1306_vm4, %v1342_v43 }
 0x24a   : > { %v2381_v50 = vpop.permute.xlu2 %2380 }
 0x24b   : > { %2536 = vst.msk [vmem:[%s3873_s3 + $0x10] sm:$0x3f] %vm1271_vm13, %v2381_v50 }
 0x252   : > { %v2397_v63 = vpop.permute.xlu2 %2396 }
 0x262   : > { %v2385_v37 = vpop.permute.xlu0 %2384 }
 0x263   : > { %2537 = vst.msk [vmem:[%s3873_s3 + $0x10] sm:$0x3f] %vm1276_vm14, %v2385_v37  ;;  %v2389_v28 = vpop.permute.xlu1 %2388 }
 0x264   : > { %2538 = vst.msk [vmem:[%s3873_s3 + $0x10] sm:$0x3f] %vm1281_vm15, %v2389_v28 }
 0x26a   : > { %v2393_v46 = vpop.permute.xlu0 %2392 }
 0x26b   : > { %2539 = vst.msk [vmem:[%s3873_s3 + $0x10] sm:$0x3f] %vm1286_vm0, %v2393_v46 }
 0x26c   : > { %2540 = vst.msk [vmem:[%s3873_s3 + $0x10] sm:$0x3f] %vm1291_vm1, %v2397_v63 }
 0x270   : > { %v2417_v35 = vpop.permute.xlu2 %2416 }
 0x272   : > { %v2401_v61 = vpop.permute.xlu0 %2400 }
 0x273   : > { %2541 = vst.msk [vmem:[%s3873_s3 + $0x10] sm:$0x3f] %vm1296_vm2, %v2401_v61 }
 0x278   : > { %v2425_v22 = vpop.permute.xlu2 %2424 }
 0x288   : > { %v2413_v57 = vpop.permute.xlu1 %2412 }
 0x289   : > { %2543 = vst.msk [vmem:[%s3873_s3 + $0x18] sm:$0x3f] %vm1265_vm12, %v2413_v57  ;;  %v2421_v26 = vpop.permute.xlu0 %2420 }
 0x28a   : > { %2544 = vst.msk [vmem:[%s3873_s3 + $0x18] sm:$0x3f] %vm1271_vm13, %v2417_v35  ;;  %v2440_v45 = vpop.permute.xlu2 %2439 }
 0x28b   : > { %2545 = vst.msk [vmem:[%s3873_s3 + $0x18] sm:$0x3f] %vm1276_vm14, %v2421_v26 }
 0x28c   : > { %2546 = vst.msk [vmem:[%s3873_s3 + $0x18] sm:$0x3f] %vm1281_vm15, %v2425_v22 }
 0x290   : > { %v2429_v5 = vpop.permute.xlu1 %2428 }
 0x291   : > { %2547 = vst.msk [vmem:[%s3873_s3 + $0x18] sm:$0x3f] %vm1286_vm0, %v2429_v5  ;;  %v2433_v27 = vpop.permute.xlu0 %2432 }
 0x292   : > { %2548 = vst.msk [vmem:[%s3873_s3 + $0x18] sm:$0x3f] %vm1291_vm1, %v2433_v27  ;;  %v2408_v25 = vpop.permute.xlu2 %2407 }
 0x298   : > { %v2438_v55 = vpop.permute.xlu1 %2437 }
 0x299   : > { %v2441_v59 = vsel %vm1337_vm5, %v2438_v55, %v2440_v45 }
 0x29a   : > { %2549 = vst.msk [vmem:[%s3873_s3 + $0x18] sm:$0x3f] %vm1296_vm2, %v2441_v59 }
 0x2a0   : > { %v2406_v9 = vpop.permute.xlu1 %2405 }
 0x2a1   : > { %v2409_v21 = vsel %vm1303_vm3, %v2406_v9, %v2408_v25 }
 0x2a2   : > { %v2445_v15 = vpop.permute.xlu0 %2444  ;;  %2542 = vst.msk [vmem:[%s3873_s3 + $0x10] sm:$0x3f] %vm1306_vm4, %v2409_v21 }
 0x2a3   : > { %2550 = vst.msk [vmem:[%s3873_s3 + $0x18] sm:$0x3f] %vm1306_vm4, %v2445_v15 }
 0x2a4 PF: > { %s12_s9 = sadd.s32 1, %s2599_s9  }
 0x2a5   : > { %p9_p4 = scmp.ge.s32.totalorder %s12_s9, 4  }
 0x2a7   :  { %11 = sbr.rel (!%p9_p4) target bundleno = 1 (0x1), region = 78 }

</bundles_post_ra>
